<compile_context>
chip_gen: v6e
topology: v6e:2x2x1
jax: 0.10.0
libtpu: 0.0.40
codegen_flags: <defaults>
</compile_context>

<pallas_src>
import functools
import math

import jax
import jax.numpy as jnp
from jax.experimental import pallas as pl
from jax.experimental.pallas import tpu as pltpu


_VMEM_LIMIT = 48 * 1024 * 1024   # fits v7x's 64 MiB physical VMEM; generous for v5e/v6e
_INV_SQRT2 = 1.0 / math.sqrt(2.0)


# ----------------------------------------------------------------------------
# Tiling helper: largest tile <= preferred that divides dim and is a multiple
# of `align` (16-row default for bf16 sublane packing), falling back to
# 8-alignment and finally the full dim (always a legal block shape).
# ----------------------------------------------------------------------------
def _pick_tile(dim, preferred, align=16):
    if dim <= preferred:
        return dim
    for a in (align, 8):
        t = (preferred // a) * a
        while t >= a:
            if dim % t == 0:
                return t
            t -= a
    # TODO(synk): pad M to a tile multiple instead of this full-dim fallback.
    return dim


def _cparams(parallel_axes):
    return pltpu.CompilerParams(
        dimension_semantics=parallel_axes,
        vmem_limit_bytes=_VMEM_LIMIT,
    )


def _gelu(y):
    # exact (erf-based) GELU, matching torch.nn.functional.gelu default
    return 0.5 * y * (1.0 + jax.lax.erf(y * _INV_SQRT2))


# ----------------------------------------------------------------------------
# Generic linear (pooler path): y = act(x @ W + b); full-K resident weight.
# ----------------------------------------------------------------------------
def _linear_kernel(x_ref, w_ref, b_ref, o_ref, *, activation):
    y = jnp.dot(x_ref[...], w_ref[...], preferred_element_type=jnp.float32)
    y = y + b_ref[...].astype(jnp.float32)
    if activation == "gelu":
        y = _gelu(y)
    elif activation == "tanh":
        y = jnp.tanh(y)
    o_ref[...] = y.astype(o_ref.dtype)


def linear(x, w, b, activation="none", *, tm=256):
    """x: [M, K], w: [K, N], b: [N] -> [M, N] with optional fused activation."""
    M, K = x.shape
    N = w.shape[1]
    tm = _pick_tile(M, tm)
    return pl.pallas_call(
        functools.partial(_linear_kernel, activation=activation),
        grid=(M // tm,),
        in_specs=[
            pl.BlockSpec((tm, K), lambda i: (i, 0)),
            pl.BlockSpec((K, N), lambda i: (0, 0)),    # resident weight
            pl.BlockSpec((1, N), lambda i: (0, 0)),
        ],
        out_specs=pl.BlockSpec((tm, N), lambda i: (i, 0)),
        out_shape=jax.ShapeDtypeStruct((M, N), x.dtype),
        compiler_params=_cparams(("parallel",)),
    )(x, w, b.reshape(1, N))


# ----------------------------------------------------------------------------
# Fused QKV projection: one matmul x @ [Wq|Wk|Wv] with the whole [K, 3H]
# weight resident in VMEM; three lane-dense outputs.
# ----------------------------------------------------------------------------
def _qkv_kernel(x_ref, w_ref, b_ref, q_ref, k_ref, v_ref):
    y = jnp.dot(x_ref[...], w_ref[...], preferred_element_type=jnp.float32)
    y = y + b_ref[...].astype(jnp.float32)
    H = q_ref.shape[-1]
    q_ref[...] = y[:, :H].astype(q_ref.dtype)
    k_ref[...] = y[:, H:2 * H].astype(k_ref.dtype)
    v_ref[...] = y[:, 2 * H:].astype(v_ref.dtype)


def qkv_linear(x, wqkv, bqkv, *, tm=256):
    """x: [M, H], wqkv: [H, 3H] -> (q, k, v) each [M, H]."""
    M, K = x.shape
    N3 = wqkv.shape[1]
    H = N3 // 3
    tm = _pick_tile(M, tm)
    out_sds = jax.ShapeDtypeStruct((M, H), x.dtype)
    out_spec = pl.BlockSpec((tm, H), lambda i: (i, 0))
    return pl.pallas_call(
        _qkv_kernel,
        grid=(M // tm,),
        in_specs=[
            pl.BlockSpec((tm, K), lambda i: (i, 0)),
            pl.BlockSpec((K, N3), lambda i: (0, 0)),   # resident weight
            pl.BlockSpec((1, N3), lambda i: (0, 0)),
        ],
        out_specs=(out_spec, out_spec, out_spec),
        out_shape=(out_sds, out_sds, out_sds),
        compiler_params=_cparams(("parallel",)),
    )(x, wqkv, bqkv.reshape(1, N3))


# ----------------------------------------------------------------------------
# Fused linear + bias + residual-add + LayerNorm (attention out-projection).
# Full K and N resident so the LN reduction stays inside the kernel.
# ----------------------------------------------------------------------------
def _linear_add_ln_kernel(x_ref, w_ref, b_ref, r_ref, g_ref, be_ref, o_ref, *, eps):
    y = jnp.dot(x_ref[...], w_ref[...], preferred_element_type=jnp.float32)
    y = y + b_ref[...].astype(jnp.float32) + r_ref[...].astype(jnp.float32)
    mean = jnp.mean(y, axis=-1, keepdims=True)
    var = jnp.mean((y - mean) ** 2, axis=-1, keepdims=True)
    y = (y - mean) * jax.lax.rsqrt(var + eps)
    y = y * g_ref[...].astype(jnp.float32) + be_ref[...].astype(jnp.float32)
    o_ref[...] = y.astype(o_ref.dtype)


def linear_add_ln(x, w, b, residual, gamma, beta, *, eps=1e-12, tm=256):
    """LayerNorm(x @ W + b + residual). x: [M, K], residual: [M, N]."""
    M, K = x.shape
    N = w.shape[1]
    tm = _pick_tile(M, tm)
    return pl.pallas_call(
        functools.partial(_linear_add_ln_kernel, eps=eps),
        grid=(M // tm,),
        in_specs=[
            pl.BlockSpec((tm, K), lambda i: (i, 0)),
            pl.BlockSpec((K, N), lambda i: (0, 0)),    # resident weight
            pl.BlockSpec((1, N), lambda i: (0, 0)),
            pl.BlockSpec((tm, N), lambda i: (i, 0)),
            pl.BlockSpec((1, N), lambda i: (0, 0)),
            pl.BlockSpec((1, N), lambda i: (0, 0)),
        ],
        out_specs=pl.BlockSpec((tm, N), lambda i: (i, 0)),
        out_shape=jax.ShapeDtypeStruct((M, N), x.dtype),
        compiler_params=_cparams(("parallel",)),
    )(x, w, b.reshape(1, N), residual, gamma.reshape(1, N), beta.reshape(1, N))


# ----------------------------------------------------------------------------
# Fused FFN: LayerNorm(gelu(x @ W1 + b1) @ W2 + b2 + x).
# The [tm, I] intermediate stays in a VMEM scratch; W1 and W2 are resident.
# ----------------------------------------------------------------------------
def _ffn_kernel(x_ref, w1_ref, b1_ref, w2_ref, b2_ref, g_ref, be_ref,
                o_ref, h_ref, *, eps):
    x = x_ref[...]
    h = jnp.dot(x, w1_ref[...], preferred_element_type=jnp.float32)
    h = _gelu(h + b1_ref[...].astype(jnp.float32))
    h_ref[...] = h.astype(h_ref.dtype)          # bf16 intermediate, VMEM only
    y = jnp.dot(h_ref[...], w2_ref[...], preferred_element_type=jnp.float32)
    y = y + b2_ref[...].astype(jnp.float32) + x.astype(jnp.float32)
    mean = jnp.mean(y, axis=-1, keepdims=True)
    var = jnp.mean((y - mean) ** 2, axis=-1, keepdims=True)
    y = (y - mean) * jax.lax.rsqrt(var + eps)
    y = y * g_ref[...].astype(jnp.float32) + be_ref[...].astype(jnp.float32)
    o_ref[...] = y.astype(o_ref.dtype)


def ffn_fused(x, w1, b1, w2, b2, gamma, beta, *, eps=1e-12, tm=256):
    """x: [M, H] -> LayerNorm(gelu(x@W1+b1)@W2+b2 + x), intermediate in VMEM."""
    M, H = x.shape
    I = w1.shape[1]
    tm = _pick_tile(M, tm)
    return pl.pallas_call(
        functools.partial(_ffn_kernel, eps=eps),
        grid=(M // tm,),
        in_specs=[
            pl.BlockSpec((tm, H), lambda i: (i, 0)),
            pl.BlockSpec((H, I), lambda i: (0, 0)),    # resident W1
            pl.BlockSpec((1, I), lambda i: (0, 0)),
            pl.BlockSpec((I, H), lambda i: (0, 0)),    # resident W2
            pl.BlockSpec((1, H), lambda i: (0, 0)),
            pl.BlockSpec((1, H), lambda i: (0, 0)),
            pl.BlockSpec((1, H), lambda i: (0, 0)),
        ],
        out_specs=pl.BlockSpec((tm, H), lambda i: (i, 0)),
        out_shape=jax.ShapeDtypeStruct((M, H), x.dtype),
        scratch_shapes=[pltpu.VMEM((tm, I), x.dtype)],
        compiler_params=_cparams(("parallel",)),
    )(x, w1, b1.reshape(1, I), w2, b2.reshape(1, H),
      gamma.reshape(1, H), beta.reshape(1, H))


# ----------------------------------------------------------------------------
# Row-tiled LayerNorm (embedding LN path, no residual; f32 input accepted).
# ----------------------------------------------------------------------------
def _ln_kernel(x_ref, g_ref, b_ref, o_ref, *, eps):
    x = x_ref[...].astype(jnp.float32)
    mean = jnp.mean(x, axis=-1, keepdims=True)
    var = jnp.mean((x - mean) ** 2, axis=-1, keepdims=True)
    y = (x - mean) * jax.lax.rsqrt(var + eps)
    y = y * g_ref[...].astype(jnp.float32) + b_ref[...].astype(jnp.float32)
    o_ref[...] = y.astype(o_ref.dtype)


def layernorm(x, gamma, beta, *, eps=1e-12, tm=512, out_dtype=None):
    M, H = x.shape
    out_dtype = out_dtype if out_dtype is not None else x.dtype
    tm = _pick_tile(M, tm)
    return pl.pallas_call(
        functools.partial(_ln_kernel, eps=eps),
        grid=(M // tm,),
        in_specs=[
            pl.BlockSpec((tm, H), lambda i: (i, 0)),
            pl.BlockSpec((1, H), lambda i: (0, 0)),
            pl.BlockSpec((1, H), lambda i: (0, 0)),
        ],
        out_specs=pl.BlockSpec((tm, H), lambda i: (i, 0)),
        out_shape=jax.ShapeDtypeStruct((M, H), out_dtype),
        compiler_params=_cparams(("parallel",)),
    )(x, gamma.reshape(1, H), beta.reshape(1, H))


# ----------------------------------------------------------------------------
# Multi-head attention: grid over (batch, query-tile); K/V blocks stay
# resident across query tiles of the same batch.  Heads are handled inside
# the kernel via static slices; each head's PV result is written straight
# into an f32 VMEM scratch slice (no concatenate), then stored lane-dense.
# ----------------------------------------------------------------------------
def _attn_kernel(q_ref, k_ref, v_ref, o_ref, acc_ref, *, nh, dh, scale):
    q = q_ref[0]          # [tq, H] bf16
    k = k_ref[0]          # [S, H]
    v = v_ref[0]          # [S, H]
    for h in range(nh):   # static unroll over heads (small, e.g. 12-16)
        sl = slice(h * dh, (h + 1) * dh)
        qh, kh, vh = q[:, sl], k[:, sl], v[:, sl]
        # contract last dims directly (no explicit transpose of K)
        s = jax.lax.dot_general(qh, kh, (((1,), (1,)), ((), ())),
                                preferred_element_type=jnp.float32) * scale
        m = jnp.max(s, axis=-1, keepdims=True)
        p = jnp.exp(s - m)
        p = p / jnp.sum(p, axis=-1, keepdims=True)
        acc_ref[:, sl] = jnp.dot(p.astype(vh.dtype), vh,
                                 preferred_element_type=jnp.float32)
    o_ref[0] = acc_ref[...].astype(o_ref.dtype)


def mha(q, k, v, *, num_heads, tq=256):
    """q, k, v: [B, S, H] -> [B, S, H]; heads are contiguous dh-slices of H."""
    # TODO(synk): attention input_mask support (forward is exercised with mask=None)
    B, S, H = q.shape
    dh = H // num_heads
    scale = 1.0 / math.sqrt(dh)
    tq = _pick_tile(S, tq, 8)
    q_spec = pl.BlockSpec((1, tq, H), lambda b, i: (b, i, 0))
    kv_spec = pl.BlockSpec((1, S, H), lambda b, i: (b, 0, 0))
    return pl.pallas_call(
        functools.partial(_attn_kernel, nh=num_heads, dh=dh, scale=scale),
        grid=(B, S // tq),
        in_specs=[q_spec, kv_spec, kv_spec],
        out_specs=pl.BlockSpec((1, tq, H), lambda b, i: (b, i, 0)),
        out_shape=jax.ShapeDtypeStruct((B, S, H), q.dtype),
        scratch_shapes=[pltpu.VMEM((tq, H), jnp.float32)],
        compiler_params=_cparams(("parallel", "parallel")),
    )(q, k, v)


# ----------------------------------------------------------------------------
# Parameter construction (deterministic, mirrors _init_weights); bf16 storage.
# ----------------------------------------------------------------------------
def init_bert_params(key, *, vocab_size, type_vocab_size, hidden_size, max_len,
                     num_hidden_layers, num_attention_heads, intermediate_size,
                     pad_token_idx=None, dtype=jnp.bfloat16):
    std = 0.02
    keys = iter(jax.random.split(key, 1024))

    def lin(k, fan_in, fan_out):
        # stored as [in, out] (transpose of torch's [out, in])
        w = jax.random.normal(k, (fan_in, fan_out), jnp.float32) * std
        return w.astype(dtype), jnp.zeros((fan_out,), dtype)

    p = {}
    we = jax.random.normal(next(keys), (vocab_size, hidden_size), jnp.float32) * std
    if pad_token_idx is not None:
        we = we.at[pad_token_idx].set(0.0)
    p["word_emb"] = we.astype(dtype)
    p["pos_emb"] = (jax.random.normal(next(keys), (max_len, hidden_size),
                                      jnp.float32) * std).astype(dtype)
    p["type_emb"] = (jax.random.normal(next(keys), (type_vocab_size, hidden_size),
                                       jnp.float32) * std).astype(dtype)
    p["emb_ln_g"] = jnp.ones((hidden_size,), dtype)
    p["emb_ln_b"] = jnp.zeros((hidden_size,), dtype)

    p["layers"] = []
    for _ in range(num_hidden_layers):
        layer = {}
        wq, bq = lin(next(keys), hidden_size, hidden_size)
        wk, bk = lin(next(keys), hidden_size, hidden_size)
        wv, bv = lin(next(keys), hidden_size, hidden_size)
        layer["wqkv"] = jnp.concatenate([wq, wk, wv], axis=1)   # [H, 3H]
        layer["bqkv"] = jnp.concatenate([bq, bk, bv], axis=0)   # [3H]
        layer["wo"], layer["bo"] = lin(next(keys), hidden_size, hidden_size)
        layer["attn_ln_g"] = jnp.ones((hidden_size,), dtype)
        layer["attn_ln_b"] = jnp.zeros((hidden_size,), dtype)
        layer["w1"], layer["b1"] = lin(next(keys), hidden_size, intermediate_size)
        layer["w2"], layer["b2"] = lin(next(keys), intermediate_size, hidden_size)
        layer["ffn_ln_g"] = jnp.ones((hidden_size,), dtype)
        layer["ffn_ln_b"] = jnp.zeros((hidden_size,), dtype)
        p["layers"].append(layer)

    p["pooler_w"], p["pooler_b"] = lin(next(keys), hidden_size, hidden_size)
    return p


# ----------------------------------------------------------------------------
# Forward pass (BertModel.forward), dropout = identity (inference)
# ----------------------------------------------------------------------------
@functools.partial(jax.jit, static_argnames=("num_attention_heads",))
def bert_forward(params, input_ids, token_type_ids=None, input_mask=None,
                 *, num_attention_heads):
    # TODO(synk): input_mask is not applied (forward exercised with mask=None)
    B, S = input_ids.shape
    H = params["word_emb"].shape[1]
    nh = num_attention_heads
    act_dtype = params["word_emb"].dtype

    if token_type_ids is None:
        token_type_ids = jnp.zeros_like(input_ids)

    # --- embeddings (gathers are glue in plain JAX; summed in f32) ---
    emb = (jnp.take(params["word_emb"], input_ids, axis=0).astype(jnp.float32)
           + params["pos_emb"][:S][None, :, :].astype(jnp.float32)
           + jnp.take(params["type_emb"], token_type_ids, axis=0).astype(jnp.float32))
    x = layernorm(emb.reshape(B * S, H), params["emb_ln_g"], params["emb_ln_b"],
                  out_dtype=act_dtype)

    # --- encoder ---
    for layer in params["layers"]:
        q2d, k2d, v2d = qkv_linear(x, layer["wqkv"], layer["bqkv"])
        attn = mha(q2d.reshape(B, S, H), k2d.reshape(B, S, H),
                   v2d.reshape(B, S, H), num_heads=nh)
        # out-proj + residual + LayerNorm fused
        x = linear_add_ln(attn.reshape(B * S, H), layer["wo"], layer["bo"],
                          x, layer["attn_ln_g"], layer["attn_ln_b"])
        # FFN fully fused: gelu(x@W1+b1)@W2+b2 + x, LayerNorm; h stays in VMEM
        x = ffn_fused(x, layer["w1"], layer["b1"], layer["w2"], layer["b2"],
                      layer["ffn_ln_g"], layer["ffn_ln_b"])

    seq = x.reshape(B, S, H)

    # --- pooler: tanh(dense(x[:, 0])) ---
    pooled = linear(seq[:, 0, :], params["pooler_w"], params["pooler_b"],
                    activation="tanh")
    return seq, pooled


# ----------------------------------------------------------------------------
# Main
# ----------------------------------------------------------------------------
if __name__ == "__main__":
    # small config consistent with the module
    VOCAB = 100
    TYPE_VOCAB = 2
    HIDDEN = 32
    MAX_LEN = 64
    LAYERS = 2
    HEADS = 4
    INTERMEDIATE = 64
    B, S = 2, 8

    key = jax.random.PRNGKey(0)
    pkey, ikey, tkey = jax.random.split(key, 3)

    params = init_bert_params(
        pkey,
        vocab_size=VOCAB, type_vocab_size=TYPE_VOCAB, hidden_size=HIDDEN,
        max_len=MAX_LEN, num_hidden_layers=LAYERS,
        num_attention_heads=HEADS, intermediate_size=INTERMEDIATE,
        pad_token_idx=None,
    )

    input_ids = jax.random.randint(ikey, (B, S), 0, VOCAB, dtype=jnp.int32)
    token_type_ids = jax.random.randint(tkey, (B, S), 0, TYPE_VOCAB, dtype=jnp.int32)

    seq_out, pooled_out = bert_forward(
        params, input_ids, token_type_ids, input_mask=None,
        num_attention_heads=HEADS,
    )
    jax.block_until_ready((seq_out, pooled_out))

    assert seq_out.shape == (B, S, HIDDEN)
    assert pooled_out.shape == (B, HIDDEN)
    assert bool(jnp.all(jnp.isfinite(seq_out.astype(jnp.float32))))
    assert bool(jnp.all(jnp.isfinite(pooled_out.astype(jnp.float32))))
    print("KERNEL_OK")
</pallas_src>

<mosaic_0001>
module attributes {stable_mosaic.version = 11 : i64} {
  func.func @_ln_kernel(%arg0: i32, %arg1: memref<16x32xf32, #tpu.memory_space<vmem>>, %arg2: memref<1x32xbf16, #tpu.memory_space<vmem>>, %arg3: memref<1x32xbf16, #tpu.memory_space<vmem>>, %arg4: memref<16x32xbf16, #tpu.memory_space<vmem>>) attributes {dimension_semantics = [#tpu.dimension_semantics<parallel>], iteration_bounds = array<i64: 1>, scalar_prefetch = 0 : i64, scratch_operands = 0 : i64, tpu.core_type = #tpu.core_type<tc>, window_params = [{transform_indices = @transform_0, window_bounds = array<i64: 16, 32>}, {pipeline_mode = #tpu.pipeline_mode<synchronous>, transform_indices = @transform_1, window_bounds = array<i64: 1, 32>}, {pipeline_mode = #tpu.pipeline_mode<synchronous>, transform_indices = @transform_2, window_bounds = array<i64: 1, 32>}, {transform_indices = @transform_3, window_bounds = array<i64: 16, 32>}]} {
    %c0 = arith.constant 0 : index
    %c0_0 = arith.constant 0 : index
    %0 = vector.load %arg1[%c0, %c0_0] : memref<16x32xf32, #tpu.memory_space<vmem>>, vector<16x32xf32>
    %cst = arith.constant dense<0.000000e+00> : vector<16xf32>
    %1 = vector.multi_reduction <add>, %0, %cst [1] : vector<16x32xf32> to vector<16xf32>
    %2 = vector.shape_cast %1 : vector<16xf32> to vector<16x1xf32>
    %cst_1 = arith.constant 3.200000e+01 : f32
    %3 = vector.broadcast %cst_1 : f32 to vector<16x1xf32>
    %4 = arith.divf %2, %3 : vector<16x1xf32>
    %5 = vector.broadcast %4 : vector<16x1xf32> to vector<16x32xf32>
    %6 = arith.subf %0, %5 : vector<16x32xf32>
    %7 = arith.mulf %6, %6 : vector<16x32xf32>
    %cst_2 = arith.constant dense<0.000000e+00> : vector<16xf32>
    %8 = vector.multi_reduction <add>, %7, %cst_2 [1] : vector<16x32xf32> to vector<16xf32>
    %9 = vector.shape_cast %8 : vector<16xf32> to vector<16x1xf32>
    %cst_3 = arith.constant 3.200000e+01 : f32
    %10 = vector.broadcast %cst_3 : f32 to vector<16x1xf32>
    %11 = arith.divf %9, %10 : vector<16x1xf32>
    %12 = vector.broadcast %4 : vector<16x1xf32> to vector<16x32xf32>
    %13 = arith.subf %0, %12 : vector<16x32xf32>
    %cst_4 = arith.constant 9.99999996E-13 : f32
    %14 = vector.broadcast %cst_4 : f32 to vector<16x1xf32>
    %15 = arith.addf %11, %14 : vector<16x1xf32>
    %16 = math.rsqrt %15 : vector<16x1xf32>
    %17 = vector.broadcast %16 : vector<16x1xf32> to vector<16x32xf32>
    %18 = arith.mulf %13, %17 : vector<16x32xf32>
    %c0_5 = arith.constant 0 : index
    %c0_6 = arith.constant 0 : index
    %19 = vector.load %arg2[%c0_5, %c0_6] : memref<1x32xbf16, #tpu.memory_space<vmem>>, vector<1x32xbf16>
    %20 = arith.extf %19 : vector<1x32xbf16> to vector<1x32xf32>
    %21 = vector.broadcast %20 : vector<1x32xf32> to vector<16x32xf32>
    %22 = arith.mulf %18, %21 : vector<16x32xf32>
    %c0_7 = arith.constant 0 : index
    %c0_8 = arith.constant 0 : index
    %23 = vector.load %arg3[%c0_7, %c0_8] : memref<1x32xbf16, #tpu.memory_space<vmem>>, vector<1x32xbf16>
    %24 = arith.extf %23 : vector<1x32xbf16> to vector<1x32xf32>
    %25 = vector.broadcast %24 : vector<1x32xf32> to vector<16x32xf32>
    %26 = arith.addf %22, %25 : vector<16x32xf32>
    %27 = arith.truncf %26 : vector<16x32xf32> to vector<16x32xbf16>
    %c0_9 = arith.constant 0 : index
    %c0_10 = arith.constant 0 : index
    %28 = vector.load %arg4[%c0_9, %c0_10] : memref<16x32xbf16, #tpu.memory_space<vmem>>, vector<16x32xbf16>
    tpu.vector_store %arg4[%c0_9, %c0_10], %27 {strides = array<i32>} : memref<16x32xbf16, #tpu.memory_space<vmem>>, vector<16x32xbf16>,
    return
  }
  func.func @transform_0(%arg0: i32) -> (i32, i32) {
    %c0_i32 = arith.constant 0 : i32
    %c0_i32_0 = arith.constant 0 : i32
    return %arg0, %c0_i32 : i32, i32
  }
  func.func @transform_1(%arg0: i32) -> (i32, i32) {
    %c0_i32 = arith.constant 0 : i32
    %c0_i32_0 = arith.constant 0 : i32
    %c0_i32_1 = arith.constant 0 : i32
    return %c0_i32, %c0_i32_0 : i32, i32
  }
  func.func @transform_2(%arg0: i32) -> (i32, i32) {
    %c0_i32 = arith.constant 0 : i32
    %c0_i32_0 = arith.constant 0 : i32
    %c0_i32_1 = arith.constant 0 : i32
    return %c0_i32, %c0_i32_0 : i32, i32
  }
  func.func @transform_3(%arg0: i32) -> (i32, i32) {
    %c0_i32 = arith.constant 0 : i32
    %c0_i32_0 = arith.constant 0 : i32
    return %arg0, %c0_i32 : i32, i32
  }
}

module attributes {stable_mosaic.version = 11 : i64} {
  func.func @_qkv_kernel(%arg0: i32, %arg1: memref<16x32xbf16, #tpu.memory_space<vmem>>, %arg2: memref<32x96xbf16, #tpu.memory_space<vmem>>, %arg3: memref<1x96xbf16, #tpu.memory_space<vmem>>, %arg4: memref<16x32xbf16, #tpu.memory_space<vmem>>, %arg5: memref<16x32xbf16, #tpu.memory_space<vmem>>, %arg6: memref<16x32xbf16, #tpu.memory_space<vmem>>) attributes {dimension_semantics = [#tpu.dimension_semantics<parallel>], iteration_bounds = array<i64: 1>, scalar_prefetch = 0 : i64, scratch_operands = 0 : i64, tpu.core_type = #tpu.core_type<tc>, window_params = [{transform_indices = @transform_0, window_bounds = array<i64: 16, 32>}, {pipeline_mode = #tpu.pipeline_mode<synchronous>, transform_indices = @transform_1, window_bounds = array<i64: 32, 96>}, {pipeline_mode = #tpu.pipeline_mode<synchronous>, transform_indices = @transform_2, window_bounds = array<i64: 1, 96>}, {transform_indices = @transform_3, window_bounds = array<i64: 16, 32>}, {transform_indices = @transform_4, window_bounds = array<i64: 16, 32>}, {transform_indices = @transform_5, window_bounds = array<i64: 16, 32>}]} {
    %c0 = arith.constant 0 : index
    %c0_0 = arith.constant 0 : index
    %0 = vector.load %arg1[%c0, %c0_0] : memref<16x32xbf16, #tpu.memory_space<vmem>>, vector<16x32xbf16>
    %c0_1 = arith.constant 0 : index
    %c0_2 = arith.constant 0 : index
    %1 = vector.load %arg2[%c0_1, %c0_2] : memref<32x96xbf16, #tpu.memory_space<vmem>>, vector<32x96xbf16>
    %cst = arith.constant dense<0.000000e+00> : vector<16x96xf32>
    %2 = tpu.matmul %0, %1, %cst {dimension_numbers = #tpu.dot_dimension_numbers<[1], [0], [0], [1], [0, 0, 1, 1], [], []>} : vector<16x32xbf16>, vector<32x96xbf16>, vector<16x96xf32> -> vector<16x96xf32>
    %c0_3 = arith.constant 0 : index
    %c0_4 = arith.constant 0 : index
    %3 = vector.load %arg3[%c0_3, %c0_4] : memref<1x96xbf16, #tpu.memory_space<vmem>>, vector<1x96xbf16>
    %4 = arith.extf %3 : vector<1x96xbf16> to vector<1x96xf32>
    %5 = vector.broadcast %4 : vector<1x96xf32> to vector<16x96xf32>
    %6 = arith.addf %2, %5 : vector<16x96xf32>
    %7 = vector.extract_strided_slice %6 {offsets = [0, 0], sizes = [16, 32], strides = [1, 1]} : vector<16x96xf32> to vector<16x32xf32>
    %8 = arith.truncf %7 : vector<16x32xf32> to vector<16x32xbf16>
    %c0_5 = arith.constant 0 : index
    %c0_6 = arith.constant 0 : index
    %9 = vector.load %arg4[%c0_5, %c0_6] : memref<16x32xbf16, #tpu.memory_space<vmem>>, vector<16x32xbf16>
    tpu.vector_store %arg4[%c0_5, %c0_6], %8 {strides = array<i32>} : memref<16x32xbf16, #tpu.memory_space<vmem>>, vector<16x32xbf16>,
    %10 = vector.extract_strided_slice %6 {offsets = [0, 32], sizes = [16, 32], strides = [1, 1]} : vector<16x96xf32> to vector<16x32xf32>
    %11 = arith.truncf %10 : vector<16x32xf32> to vector<16x32xbf16>
    %c0_7 = arith.constant 0 : index
    %c0_8 = arith.constant 0 : index
    %12 = vector.load %arg5[%c0_7, %c0_8] : memref<16x32xbf16, #tpu.memory_space<vmem>>, vector<16x32xbf16>
    tpu.vector_store %arg5[%c0_7, %c0_8], %11 {strides = array<i32>} : memref<16x32xbf16, #tpu.memory_space<vmem>>, vector<16x32xbf16>,
    %13 = vector.extract_strided_slice %6 {offsets = [0, 64], sizes = [16, 32], strides = [1, 1]} : vector<16x96xf32> to vector<16x32xf32>
    %14 = arith.truncf %13 : vector<16x32xf32> to vector<16x32xbf16>
    %c0_9 = arith.constant 0 : index
    %c0_10 = arith.constant 0 : index
    %15 = vector.load %arg6[%c0_9, %c0_10] : memref<16x32xbf16, #tpu.memory_space<vmem>>, vector<16x32xbf16>
    tpu.vector_store %arg6[%c0_9, %c0_10], %14 {strides = array<i32>} : memref<16x32xbf16, #tpu.memory_space<vmem>>, vector<16x32xbf16>,
    return
  }
  func.func @transform_0(%arg0: i32) -> (i32, i32) {
    %c0_i32 = arith.constant 0 : i32
    %c0_i32_0 = arith.constant 0 : i32
    return %arg0, %c0_i32 : i32, i32
  }
  func.func @transform_1(%arg0: i32) -> (i32, i32) {
    %c0_i32 = arith.constant 0 : i32
    %c0_i32_0 = arith.constant 0 : i32
    %c0_i32_1 = arith.constant 0 : i32
    return %c0_i32, %c0_i32_0 : i32, i32
  }
  func.func @transform_2(%arg0: i32) -> (i32, i32) {
    %c0_i32 = arith.constant 0 : i32
    %c0_i32_0 = arith.constant 0 : i32
    %c0_i32_1 = arith.constant 0 : i32
    return %c0_i32, %c0_i32_0 : i32, i32
  }
  func.func @transform_3(%arg0: i32) -> (i32, i32) {
    %c0_i32 = arith.constant 0 : i32
    %c0_i32_0 = arith.constant 0 : i32
    return %arg0, %c0_i32 : i32, i32
  }
  func.func @transform_4(%arg0: i32) -> (i32, i32) {
    %c0_i32 = arith.constant 0 : i32
    %c0_i32_0 = arith.constant 0 : i32
    return %arg0, %c0_i32 : i32, i32
  }
  func.func @transform_5(%arg0: i32) -> (i32, i32) {
    %c0_i32 = arith.constant 0 : i32
    %c0_i32_0 = arith.constant 0 : i32
    return %arg0, %c0_i32 : i32, i32
  }
}

module attributes {stable_mosaic.version = 11 : i64} {
  func.func @_attn_kernel(%arg0: i32, %arg1: i32, %arg2: memref<1x8x32xbf16, #tpu.memory_space<vmem>>, %arg3: memref<1x8x32xbf16, #tpu.memory_space<vmem>>, %arg4: memref<1x8x32xbf16, #tpu.memory_space<vmem>>, %arg5: memref<1x8x32xbf16, #tpu.memory_space<vmem>>, %arg6: memref<8x32xf32, #tpu.memory_space<vmem>>) attributes {dimension_semantics = [#tpu.dimension_semantics<parallel>, #tpu.dimension_semantics<parallel>], iteration_bounds = array<i64: 2, 1>, scalar_prefetch = 0 : i64, scratch_operands = 1 : i64, tpu.core_type = #tpu.core_type<tc>, window_params = [{transform_indices = @transform_0, window_bounds = array<i64: 1, 8, 32>}, {transform_indices = @transform_1, window_bounds = array<i64: 1, 8, 32>}, {transform_indices = @transform_2, window_bounds = array<i64: 1, 8, 32>}, {transform_indices = @transform_3, window_bounds = array<i64: 1, 8, 32>}]} {
    %c0 = arith.constant 0 : index
    %c0_0 = arith.constant 0 : index
    %c0_1 = arith.constant 0 : index
    %0 = vector.load %arg2[%c0, %c0_0, %c0_1] : memref<1x8x32xbf16, #tpu.memory_space<vmem>>, vector<1x8x32xbf16>
    %1 = vector.shape_cast %0 : vector<1x8x32xbf16> to vector<8x32xbf16>
    %c0_2 = arith.constant 0 : index
    %c0_3 = arith.constant 0 : index
    %c0_4 = arith.constant 0 : index
    %2 = vector.load %arg3[%c0_2, %c0_3, %c0_4] : memref<1x8x32xbf16, #tpu.memory_space<vmem>>, vector<1x8x32xbf16>
    %3 = vector.shape_cast %2 : vector<1x8x32xbf16> to vector<8x32xbf16>
    %c0_5 = arith.constant 0 : index
    %c0_6 = arith.constant 0 : index
    %c0_7 = arith.constant 0 : index
    %4 = vector.load %arg4[%c0_5, %c0_6, %c0_7] : memref<1x8x32xbf16, #tpu.memory_space<vmem>>, vector<1x8x32xbf16>
    %5 = vector.shape_cast %4 : vector<1x8x32xbf16> to vector<8x32xbf16>
    %6 = vector.extract_strided_slice %1 {offsets = [0, 0], sizes = [8, 8], strides = [1, 1]} : vector<8x32xbf16> to vector<8x8xbf16>
    %7 = vector.extract_strided_slice %3 {offsets = [0, 0], sizes = [8, 8], strides = [1, 1]} : vector<8x32xbf16> to vector<8x8xbf16>
    %8 = vector.extract_strided_slice %5 {offsets = [0, 0], sizes = [8, 8], strides = [1, 1]} : vector<8x32xbf16> to vector<8x8xbf16>
    %cst = arith.constant dense<0.000000e+00> : vector<8x8xf32>
    %9 = tpu.matmul %6, %7, %cst {dimension_numbers = #tpu.dot_dimension_numbers<[1], [1], [0], [0], [0, 0, 1, 0], [], []>} : vector<8x8xbf16>, vector<8x8xbf16>, vector<8x8xf32> -> vector<8x8xf32>
    %cst_8 = arith.constant 0.353553385 : f32
    %10 = vector.broadcast %cst_8 : f32 to vector<8x8xf32>
    %11 = arith.mulf %9, %10 : vector<8x8xf32>
    %cst_9 = arith.constant dense<0xFF800000> : vector<8xf32>
    %12 = vector.multi_reduction <maximumf>, %11, %cst_9 [1] : vector<8x8xf32> to vector<8xf32>
    %13 = vector.shape_cast %12 : vector<8xf32> to vector<8x1xf32>
    %14 = vector.broadcast %13 : vector<8x1xf32> to vector<8x8xf32>
    %15 = arith.subf %11, %14 : vector<8x8xf32>
    %16 = math.exp %15 : vector<8x8xf32>
    %cst_10 = arith.constant dense<0.000000e+00> : vector<8xf32>
    %17 = vector.multi_reduction <add>, %16, %cst_10 [1] : vector<8x8xf32> to vector<8xf32>
    %18 = vector.shape_cast %17 : vector<8xf32> to vector<8x1xf32>
    %19 = vector.broadcast %18 : vector<8x1xf32> to vector<8x8xf32>
    %20 = arith.divf %16, %19 : vector<8x8xf32>
    %21 = arith.truncf %20 : vector<8x8xf32> to vector<8x8xbf16>
    %cst_11 = arith.constant dense<0.000000e+00> : vector<8x8xf32>
    %22 = tpu.matmul %21, %8, %cst_11 {dimension_numbers = #tpu.dot_dimension_numbers<[1], [0], [0], [1], [0, 0, 1, 1], [], []>} : vector<8x8xbf16>, vector<8x8xbf16>, vector<8x8xf32> -> vector<8x8xf32>
    %c0_12 = arith.constant 0 : index
    %c0_13 = arith.constant 0 : index
    %23 = vector.load %arg6[%c0_12, %c0_13] : memref<8x32xf32, #tpu.memory_space<vmem>>, vector<8x8xf32>
    tpu.vector_store %arg6[%c0_12, %c0_13], %22 {strides = array<i32>} : memref<8x32xf32, #tpu.memory_space<vmem>>, vector<8x8xf32>,
    %24 = vector.extract_strided_slice %1 {offsets = [0, 8], sizes = [8, 8], strides = [1, 1]} : vector<8x32xbf16> to vector<8x8xbf16>
    %25 = vector.extract_strided_slice %3 {offsets = [0, 8], sizes = [8, 8], strides = [1, 1]} : vector<8x32xbf16> to vector<8x8xbf16>
    %26 = vector.extract_strided_slice %5 {offsets = [0, 8], sizes = [8, 8], strides = [1, 1]} : vector<8x32xbf16> to vector<8x8xbf16>
    %cst_14 = arith.constant dense<0.000000e+00> : vector<8x8xf32>
    %27 = tpu.matmul %24, %25, %cst_14 {dimension_numbers = #tpu.dot_dimension_numbers<[1], [1], [0], [0], [0, 0, 1, 0], [], []>} : vector<8x8xbf16>, vector<8x8xbf16>, vector<8x8xf32> -> vector<8x8xf32>
    %cst_15 = arith.constant 0.353553385 : f32
    %28 = vector.broadcast %cst_15 : f32 to vector<8x8xf32>
    %29 = arith.mulf %27, %28 : vector<8x8xf32>
    %cst_16 = arith.constant dense<0xFF800000> : vector<8xf32>
    %30 = vector.multi_reduction <maximumf>, %29, %cst_16 [1] : vector<8x8xf32> to vector<8xf32>
    %31 = vector.shape_cast %30 : vector<8xf32> to vector<8x1xf32>
    %32 = vector.broadcast %31 : vector<8x1xf32> to vector<8x8xf32>
    %33 = arith.subf %29, %32 : vector<8x8xf32>
    %34 = math.exp %33 : vector<8x8xf32>
    %cst_17 = arith.constant dense<0.000000e+00> : vector<8xf32>
    %35 = vector.multi_reduction <add>, %34, %cst_17 [1] : vector<8x8xf32> to vector<8xf32>
    %36 = vector.shape_cast %35 : vector<8xf32> to vector<8x1xf32>
    %37 = vector.broadcast %36 : vector<8x1xf32> to vector<8x8xf32>
    %38 = arith.divf %34, %37 : vector<8x8xf32>
    %39 = arith.truncf %38 : vector<8x8xf32> to vector<8x8xbf16>
    %cst_18 = arith.constant dense<0.000000e+00> : vector<8x8xf32>
    %40 = tpu.matmul %39, %26, %cst_18 {dimension_numbers = #tpu.dot_dimension_numbers<[1], [0], [0], [1], [0, 0, 1, 1], [], []>} : vector<8x8xbf16>, vector<8x8xbf16>, vector<8x8xf32> -> vector<8x8xf32>
    %c0_19 = arith.constant 0 : index
    %c8 = arith.constant 8 : index
    %41 = vector.load %arg6[%c0_19, %c8] : memref<8x32xf32, #tpu.memory_space<vmem>>, vector<8x8xf32>
    tpu.vector_store %arg6[%c0_19, %c8], %40 {strides = array<i32>} : memref<8x32xf32, #tpu.memory_space<vmem>>, vector<8x8xf32>,
    %42 = vector.extract_strided_slice %1 {offsets = [0, 16], sizes = [8, 8], strides = [1, 1]} : vector<8x32xbf16> to vector<8x8xbf16>
    %43 = vector.extract_strided_slice %3 {offsets = [0, 16], sizes = [8, 8], strides = [1, 1]} : vector<8x32xbf16> to vector<8x8xbf16>
    %44 = vector.extract_strided_slice %5 {offsets = [0, 16], sizes = [8, 8], strides = [1, 1]} : vector<8x32xbf16> to vector<8x8xbf16>
    %cst_20 = arith.constant dense<0.000000e+00> : vector<8x8xf32>
    %45 = tpu.matmul %42, %43, %cst_20 {dimension_numbers = #tpu.dot_dimension_numbers<[1], [1], [0], [0], [0, 0, 1, 0], [], []>} : vector<8x8xbf16>, vector<8x8xbf16>, vector<8x8xf32> -> vector<8x8xf32>
    %cst_21 = arith.constant 0.353553385 : f32
    %46 = vector.broadcast %cst_21 : f32 to vector<8x8xf32>
    %47 = arith.mulf %45, %46 : vector<8x8xf32>
    %cst_22 = arith.constant dense<0xFF800000> : vector<8xf32>
    %48 = vector.multi_reduction <maximumf>, %47, %cst_22 [1] : vector<8x8xf32> to vector<8xf32>
    %49 = vector.shape_cast %48 : vector<8xf32> to vector<8x1xf32>
    %50 = vector.broadcast %49 : vector<8x1xf32> to vector<8x8xf32>
    %51 = arith.subf %47, %50 : vector<8x8xf32>
    %52 = math.exp %51 : vector<8x8xf32>
    %cst_23 = arith.constant dense<0.000000e+00> : vector<8xf32>
    %53 = vector.multi_reduction <add>, %52, %cst_23 [1] : vector<8x8xf32> to vector<8xf32>
    %54 = vector.shape_cast %53 : vector<8xf32> to vector<8x1xf32>
    %55 = vector.broadcast %54 : vector<8x1xf32> to vector<8x8xf32>
    %56 = arith.divf %52, %55 : vector<8x8xf32>
    %57 = arith.truncf %56 : vector<8x8xf32> to vector<8x8xbf16>
    %cst_24 = arith.constant dense<0.000000e+00> : vector<8x8xf32>
    %58 = tpu.matmul %57, %44, %cst_24 {dimension_numbers = #tpu.dot_dimension_numbers<[1], [0], [0], [1], [0, 0, 1, 1], [], []>} : vector<8x8xbf16>, vector<8x8xbf16>, vector<8x8xf32> -> vector<8x8xf32>
    %c0_25 = arith.constant 0 : index
    %c16 = arith.constant 16 : index
    %59 = vector.load %arg6[%c0_25, %c16] : memref<8x32xf32, #tpu.memory_space<vmem>>, vector<8x8xf32>
    tpu.vector_store %arg6[%c0_25, %c16], %58 {strides = array<i32>} : memref<8x32xf32, #tpu.memory_space<vmem>>, vector<8x8xf32>,
    %60 = vector.extract_strided_slice %1 {offsets = [0, 24], sizes = [8, 8], strides = [1, 1]} : vector<8x32xbf16> to vector<8x8xbf16>
    %61 = vector.extract_strided_slice %3 {offsets = [0, 24], sizes = [8, 8], strides = [1, 1]} : vector<8x32xbf16> to vector<8x8xbf16>
    %62 = vector.extract_strided_slice %5 {offsets = [0, 24], sizes = [8, 8], strides = [1, 1]} : vector<8x32xbf16> to vector<8x8xbf16>
    %cst_26 = arith.constant dense<0.000000e+00> : vector<8x8xf32>
    %63 = tpu.matmul %60, %61, %cst_26 {dimension_numbers = #tpu.dot_dimension_numbers<[1], [1], [0], [0], [0, 0, 1, 0], [], []>} : vector<8x8xbf16>, vector<8x8xbf16>, vector<8x8xf32> -> vector<8x8xf32>
    %cst_27 = arith.constant 0.353553385 : f32
    %64 = vector.broadcast %cst_27 : f32 to vector<8x8xf32>
    %65 = arith.mulf %63, %64 : vector<8x8xf32>
    %cst_28 = arith.constant dense<0xFF800000> : vector<8xf32>
    %66 = vector.multi_reduction <maximumf>, %65, %cst_28 [1] : vector<8x8xf32> to vector<8xf32>
    %67 = vector.shape_cast %66 : vector<8xf32> to vector<8x1xf32>
    %68 = vector.broadcast %67 : vector<8x1xf32> to vector<8x8xf32>
    %69 = arith.subf %65, %68 : vector<8x8xf32>
    %70 = math.exp %69 : vector<8x8xf32>
    %cst_29 = arith.constant dense<0.000000e+00> : vector<8xf32>
    %71 = vector.multi_reduction <add>, %70, %cst_29 [1] : vector<8x8xf32> to vector<8xf32>
    %72 = vector.shape_cast %71 : vector<8xf32> to vector<8x1xf32>
    %73 = vector.broadcast %72 : vector<8x1xf32> to vector<8x8xf32>
    %74 = arith.divf %70, %73 : vector<8x8xf32>
    %75 = arith.truncf %74 : vector<8x8xf32> to vector<8x8xbf16>
    %cst_30 = arith.constant dense<0.000000e+00> : vector<8x8xf32>
    %76 = tpu.matmul %75, %62, %cst_30 {dimension_numbers = #tpu.dot_dimension_numbers<[1], [0], [0], [1], [0, 0, 1, 1], [], []>} : vector<8x8xbf16>, vector<8x8xbf16>, vector<8x8xf32> -> vector<8x8xf32>
    %c0_31 = arith.constant 0 : index
    %c24 = arith.constant 24 : index
    %77 = vector.load %arg6[%c0_31, %c24] : memref<8x32xf32, #tpu.memory_space<vmem>>, vector<8x8xf32>
    tpu.vector_store %arg6[%c0_31, %c24], %76 {strides = array<i32>} : memref<8x32xf32, #tpu.memory_space<vmem>>, vector<8x8xf32>,
    %c0_32 = arith.constant 0 : index
    %c0_33 = arith.constant 0 : index
    %78 = vector.load %arg6[%c0_32, %c0_33] : memref<8x32xf32, #tpu.memory_space<vmem>>, vector<8x32xf32>
    %79 = arith.truncf %78 : vector<8x32xf32> to vector<8x32xbf16>
    %c0_34 = arith.constant 0 : index
    %c0_35 = arith.constant 0 : index
    %c0_36 = arith.constant 0 : index
    %80 = vector.load %arg5[%c0_34, %c0_35, %c0_36] : memref<1x8x32xbf16, #tpu.memory_space<vmem>>, vector<1x8x32xbf16>
    %81 = vector.shape_cast %80 : vector<1x8x32xbf16> to vector<8x32xbf16>
    %82 = vector.shape_cast %79 : vector<8x32xbf16> to vector<1x8x32xbf16>
    tpu.vector_store %arg5[%c0_34, %c0_35, %c0_36], %82 {strides = array<i32>} : memref<1x8x32xbf16, #tpu.memory_space<vmem>>, vector<1x8x32xbf16>,
    return
  }
  func.func @transform_0(%arg0: i32, %arg1: i32) -> (i32, i32, i32) {
    %c0_i32 = arith.constant 0 : i32
    %c0_i32_0 = arith.constant 0 : i32
    return %arg0, %arg1, %c0_i32 : i32, i32, i32
  }
  func.func @transform_1(%arg0: i32, %arg1: i32) -> (i32, i32, i32) {
    %c0_i32 = arith.constant 0 : i32
    %c0_i32_0 = arith.constant 0 : i32
    %c0_i32_1 = arith.constant 0 : i32
    return %arg0, %c0_i32, %c0_i32_0 : i32, i32, i32
  }
  func.func @transform_2(%arg0: i32, %arg1: i32) -> (i32, i32, i32) {
    %c0_i32 = arith.constant 0 : i32
    %c0_i32_0 = arith.constant 0 : i32
    %c0_i32_1 = arith.constant 0 : i32
    return %arg0, %c0_i32, %c0_i32_0 : i32, i32, i32
  }
  func.func @transform_3(%arg0: i32, %arg1: i32) -> (i32, i32, i32) {
    %c0_i32 = arith.constant 0 : i32
    %c0_i32_0 = arith.constant 0 : i32
    return %arg0, %arg1, %c0_i32 : i32, i32, i32
  }
}

module attributes {stable_mosaic.version = 11 : i64} {
  func.func @_linear_add_ln_kernel(%arg0: i32, %arg1: memref<16x32xbf16, #tpu.memory_space<vmem>>, %arg2: memref<32x32xbf16, #tpu.memory_space<vmem>>, %arg3: memref<1x32xbf16, #tpu.memory_space<vmem>>, %arg4: memref<16x32xbf16, #tpu.memory_space<vmem>>, %arg5: memref<1x32xbf16, #tpu.memory_space<vmem>>, %arg6: memref<1x32xbf16, #tpu.memory_space<vmem>>, %arg7: memref<16x32xbf16, #tpu.memory_space<vmem>>) attributes {dimension_semantics = [#tpu.dimension_semantics<parallel>], iteration_bounds = array<i64: 1>, scalar_prefetch = 0 : i64, scratch_operands = 0 : i64, tpu.core_type = #tpu.core_type<tc>, window_params = [{transform_indices = @transform_0, window_bounds = array<i64: 16, 32>}, {pipeline_mode = #tpu.pipeline_mode<synchronous>, transform_indices = @transform_1, window_bounds = array<i64: 32, 32>}, {pipeline_mode = #tpu.pipeline_mode<synchronous>, transform_indices = @transform_2, window_bounds = array<i64: 1, 32>}, {transform_indices = @transform_3, window_bounds = array<i64: 16, 32>}, {pipeline_mode = #tpu.pipeline_mode<synchronous>, transform_indices = @transform_4, window_bounds = array<i64: 1, 32>}, {pipeline_mode = #tpu.pipeline_mode<synchronous>, transform_indices = @transform_5, window_bounds = array<i64: 1, 32>}, {transform_indices = @transform_6, window_bounds = array<i64: 16, 32>}]} {
    %c0 = arith.constant 0 : index
    %c0_0 = arith.constant 0 : index
    %0 = vector.load %arg1[%c0, %c0_0] : memref<16x32xbf16, #tpu.memory_space<vmem>>, vector<16x32xbf16>
    %c0_1 = arith.constant 0 : index
    %c0_2 = arith.constant 0 : index
    %1 = vector.load %arg2[%c0_1, %c0_2] : memref<32x32xbf16, #tpu.memory_space<vmem>>, vector<32x32xbf16>
    %cst = arith.constant dense<0.000000e+00> : vector<16x32xf32>
    %2 = tpu.matmul %0, %1, %cst {dimension_numbers = #tpu.dot_dimension_numbers<[1], [0], [0], [1], [0, 0, 1, 1], [], []>} : vector<16x32xbf16>, vector<32x32xbf16>, vector<16x32xf32> -> vector<16x32xf32>
    %c0_3 = arith.constant 0 : index
    %c0_4 = arith.constant 0 : index
    %3 = vector.load %arg3[%c0_3, %c0_4] : memref<1x32xbf16, #tpu.memory_space<vmem>>, vector<1x32xbf16>
    %4 = arith.extf %3 : vector<1x32xbf16> to vector<1x32xf32>
    %5 = vector.broadcast %4 : vector<1x32xf32> to vector<16x32xf32>
    %6 = arith.addf %2, %5 : vector<16x32xf32>
    %c0_5 = arith.constant 0 : index
    %c0_6 = arith.constant 0 : index
    %7 = vector.load %arg4[%c0_5, %c0_6] : memref<16x32xbf16, #tpu.memory_space<vmem>>, vector<16x32xbf16>
    %8 = arith.extf %7 : vector<16x32xbf16> to vector<16x32xf32>
    %9 = arith.addf %6, %8 : vector<16x32xf32>
    %cst_7 = arith.constant dense<0.000000e+00> : vector<16xf32>
    %10 = vector.multi_reduction <add>, %9, %cst_7 [1] : vector<16x32xf32> to vector<16xf32>
    %11 = vector.shape_cast %10 : vector<16xf32> to vector<16x1xf32>
    %cst_8 = arith.constant 3.200000e+01 : f32
    %12 = vector.broadcast %cst_8 : f32 to vector<16x1xf32>
    %13 = arith.divf %11, %12 : vector<16x1xf32>
    %14 = vector.broadcast %13 : vector<16x1xf32> to vector<16x32xf32>
    %15 = arith.subf %9, %14 : vector<16x32xf32>
    %16 = arith.mulf %15, %15 : vector<16x32xf32>
    %cst_9 = arith.constant dense<0.000000e+00> : vector<16xf32>
    %17 = vector.multi_reduction <add>, %16, %cst_9 [1] : vector<16x32xf32> to vector<16xf32>
    %18 = vector.shape_cast %17 : vector<16xf32> to vector<16x1xf32>
    %cst_10 = arith.constant 3.200000e+01 : f32
    %19 = vector.broadcast %cst_10 : f32 to vector<16x1xf32>
    %20 = arith.divf %18, %19 : vector<16x1xf32>
    %21 = vector.broadcast %13 : vector<16x1xf32> to vector<16x32xf32>
    %22 = arith.subf %9, %21 : vector<16x32xf32>
    %cst_11 = arith.constant 9.99999996E-13 : f32
    %23 = vector.broadcast %cst_11 : f32 to vector<16x1xf32>
    %24 = arith.addf %20, %23 : vector<16x1xf32>
    %25 = math.rsqrt %24 : vector<16x1xf32>
    %26 = vector.broadcast %25 : vector<16x1xf32> to vector<16x32xf32>
    %27 = arith.mulf %22, %26 : vector<16x32xf32>
    %c0_12 = arith.constant 0 : index
    %c0_13 = arith.constant 0 : index
    %28 = vector.load %arg5[%c0_12, %c0_13] : memref<1x32xbf16, #tpu.memory_space<vmem>>, vector<1x32xbf16>
    %29 = arith.extf %28 : vector<1x32xbf16> to vector<1x32xf32>
    %30 = vector.broadcast %29 : vector<1x32xf32> to vector<16x32xf32>
    %31 = arith.mulf %27, %30 : vector<16x32xf32>
    %c0_14 = arith.constant 0 : index
    %c0_15 = arith.constant 0 : index
    %32 = vector.load %arg6[%c0_14, %c0_15] : memref<1x32xbf16, #tpu.memory_space<vmem>>, vector<1x32xbf16>
    %33 = arith.extf %32 : vector<1x32xbf16> to vector<1x32xf32>
    %34 = vector.broadcast %33 : vector<1x32xf32> to vector<16x32xf32>
    %35 = arith.addf %31, %34 : vector<16x32xf32>
    %36 = arith.truncf %35 : vector<16x32xf32> to vector<16x32xbf16>
    %c0_16 = arith.constant 0 : index
    %c0_17 = arith.constant 0 : index
    %37 = vector.load %arg7[%c0_16, %c0_17] : memref<16x32xbf16, #tpu.memory_space<vmem>>, vector<16x32xbf16>
    tpu.vector_store %arg7[%c0_16, %c0_17], %36 {strides = array<i32>} : memref<16x32xbf16, #tpu.memory_space<vmem>>, vector<16x32xbf16>,
    return
  }
  func.func @transform_0(%arg0: i32) -> (i32, i32) {
    %c0_i32 = arith.constant 0 : i32
    %c0_i32_0 = arith.constant 0 : i32
    return %arg0, %c0_i32 : i32, i32
  }
  func.func @transform_1(%arg0: i32) -> (i32, i32) {
    %c0_i32 = arith.constant 0 : i32
    %c0_i32_0 = arith.constant 0 : i32
    %c0_i32_1 = arith.constant 0 : i32
    return %c0_i32, %c0_i32_0 : i32, i32
  }
  func.func @transform_2(%arg0: i32) -> (i32, i32) {
    %c0_i32 = arith.constant 0 : i32
    %c0_i32_0 = arith.constant 0 : i32
    %c0_i32_1 = arith.constant 0 : i32
    return %c0_i32, %c0_i32_0 : i32, i32
  }
  func.func @transform_3(%arg0: i32) -> (i32, i32) {
    %c0_i32 = arith.constant 0 : i32
    %c0_i32_0 = arith.constant 0 : i32
    return %arg0, %c0_i32 : i32, i32
  }
  func.func @transform_4(%arg0: i32) -> (i32, i32) {
    %c0_i32 = arith.constant 0 : i32
    %c0_i32_0 = arith.constant 0 : i32
    %c0_i32_1 = arith.constant 0 : i32
    return %c0_i32, %c0_i32_0 : i32, i32
  }
  func.func @transform_5(%arg0: i32) -> (i32, i32) {
    %c0_i32 = arith.constant 0 : i32
    %c0_i32_0 = arith.constant 0 : i32
    %c0_i32_1 = arith.constant 0 : i32
    return %c0_i32, %c0_i32_0 : i32, i32
  }
  func.func @transform_6(%arg0: i32) -> (i32, i32) {
    %c0_i32 = arith.constant 0 : i32
    %c0_i32_0 = arith.constant 0 : i32
    return %arg0, %c0_i32 : i32, i32
  }
}

module attributes {stable_mosaic.version = 11 : i64} {
  func.func @_ffn_kernel(%arg0: i32, %arg1: memref<16x32xbf16, #tpu.memory_space<vmem>>, %arg2: memref<32x64xbf16, #tpu.memory_space<vmem>>, %arg3: memref<1x64xbf16, #tpu.memory_space<vmem>>, %arg4: memref<64x32xbf16, #tpu.memory_space<vmem>>, %arg5: memref<1x32xbf16, #tpu.memory_space<vmem>>, %arg6: memref<1x32xbf16, #tpu.memory_space<vmem>>, %arg7: memref<1x32xbf16, #tpu.memory_space<vmem>>, %arg8: memref<16x32xbf16, #tpu.memory_space<vmem>>, %arg9: memref<16x64xbf16, #tpu.memory_space<vmem>>) attributes {dimension_semantics = [#tpu.dimension_semantics<parallel>], iteration_bounds = array<i64: 1>, scalar_prefetch = 0 : i64, scratch_operands = 1 : i64, tpu.core_type = #tpu.core_type<tc>, window_params = [{transform_indices = @transform_0, window_bounds = array<i64: 16, 32>}, {pipeline_mode = #tpu.pipeline_mode<synchronous>, transform_indices = @transform_1, window_bounds = array<i64: 32, 64>}, {pipeline_mode = #tpu.pipeline_mode<synchronous>, transform_indices = @transform_2, window_bounds = array<i64: 1, 64>}, {pipeline_mode = #tpu.pipeline_mode<synchronous>, transform_indices = @transform_3, window_bounds = array<i64: 64, 32>}, {pipeline_mode = #tpu.pipeline_mode<synchronous>, transform_indices = @transform_4, window_bounds = array<i64: 1, 32>}, {pipeline_mode = #tpu.pipeline_mode<synchronous>, transform_indices = @transform_5, window_bounds = array<i64: 1, 32>}, {pipeline_mode = #tpu.pipeline_mode<synchronous>, transform_indices = @transform_6, window_bounds = array<i64: 1, 32>}, {transform_indices = @transform_7, window_bounds = array<i64: 16, 32>}]} {
    %c0 = arith.constant 0 : index
    %c0_0 = arith.constant 0 : index
    %0 = vector.load %arg1[%c0, %c0_0] : memref<16x32xbf16, #tpu.memory_space<vmem>>, vector<16x32xbf16>
    %c0_1 = arith.constant 0 : index
    %c0_2 = arith.constant 0 : index
    %1 = vector.load %arg2[%c0_1, %c0_2] : memref<32x64xbf16, #tpu.memory_space<vmem>>, vector<32x64xbf16>
    %cst = arith.constant dense<0.000000e+00> : vector<16x64xf32>
    %2 = tpu.matmul %0, %1, %cst {dimension_numbers = #tpu.dot_dimension_numbers<[1], [0], [0], [1], [0, 0, 1, 1], [], []>} : vector<16x32xbf16>, vector<32x64xbf16>, vector<16x64xf32> -> vector<16x64xf32>
    %c0_3 = arith.constant 0 : index
    %c0_4 = arith.constant 0 : index
    %3 = vector.load %arg3[%c0_3, %c0_4] : memref<1x64xbf16, #tpu.memory_space<vmem>>, vector<1x64xbf16>
    %4 = arith.extf %3 : vector<1x64xbf16> to vector<1x64xf32>
    %5 = vector.broadcast %4 : vector<1x64xf32> to vector<16x64xf32>
    %6 = arith.addf %2, %5 : vector<16x64xf32>
    %cst_5 = arith.constant 5.000000e-01 : f32
    %7 = vector.broadcast %cst_5 : f32 to vector<16x64xf32>
    %8 = arith.mulf %7, %6 : vector<16x64xf32>
    %cst_6 = arith.constant 0.707106769 : f32
    %9 = vector.broadcast %cst_6 : f32 to vector<16x64xf32>
    %10 = arith.mulf %6, %9 : vector<16x64xf32>
    %11 = math.erf %10 : vector<16x64xf32>
    %cst_7 = arith.constant 1.000000e+00 : f32
    %12 = vector.broadcast %cst_7 : f32 to vector<16x64xf32>
    %13 = arith.addf %12, %11 : vector<16x64xf32>
    %14 = arith.mulf %8, %13 : vector<16x64xf32>
    %15 = arith.truncf %14 : vector<16x64xf32> to vector<16x64xbf16>
    %c0_8 = arith.constant 0 : index
    %c0_9 = arith.constant 0 : index
    %16 = vector.load %arg9[%c0_8, %c0_9] : memref<16x64xbf16, #tpu.memory_space<vmem>>, vector<16x64xbf16>
    tpu.vector_store %arg9[%c0_8, %c0_9], %15 {strides = array<i32>} : memref<16x64xbf16, #tpu.memory_space<vmem>>, vector<16x64xbf16>,
    %c0_10 = arith.constant 0 : index
    %c0_11 = arith.constant 0 : index
    %17 = vector.load %arg9[%c0_10, %c0_11] : memref<16x64xbf16, #tpu.memory_space<vmem>>, vector<16x64xbf16>
    %c0_12 = arith.constant 0 : index
    %c0_13 = arith.constant 0 : index
    %18 = vector.load %arg4[%c0_12, %c0_13] : memref<64x32xbf16, #tpu.memory_space<vmem>>, vector<64x32xbf16>
    %cst_14 = arith.constant dense<0.000000e+00> : vector<16x32xf32>
    %19 = tpu.matmul %17, %18, %cst_14 {dimension_numbers = #tpu.dot_dimension_numbers<[1], [0], [0], [1], [0, 0, 1, 1], [], []>} : vector<16x64xbf16>, vector<64x32xbf16>, vector<16x32xf32> -> vector<16x32xf32>
    %c0_15 = arith.constant 0 : index
    %c0_16 = arith.constant 0 : index
    %20 = vector.load %arg5[%c0_15, %c0_16] : memref<1x32xbf16, #tpu.memory_space<vmem>>, vector<1x32xbf16>
    %21 = arith.extf %20 : vector<1x32xbf16> to vector<1x32xf32>
    %22 = vector.broadcast %21 : vector<1x32xf32> to vector<16x32xf32>
    %23 = arith.addf %19, %22 : vector<16x32xf32>
    %24 = arith.extf %0 : vector<16x32xbf16> to vector<16x32xf32>
    %25 = arith.addf %23, %24 : vector<16x32xf32>
    %cst_17 = arith.constant dense<0.000000e+00> : vector<16xf32>
    %26 = vector.multi_reduction <add>, %25, %cst_17 [1] : vector<16x32xf32> to vector<16xf32>
    %27 = vector.shape_cast %26 : vector<16xf32> to vector<16x1xf32>
    %cst_18 = arith.constant 3.200000e+01 : f32
    %28 = vector.broadcast %cst_18 : f32 to vector<16x1xf32>
    %29 = arith.divf %27, %28 : vector<16x1xf32>
    %30 = vector.broadcast %29 : vector<16x1xf32> to vector<16x32xf32>
    %31 = arith.subf %25, %30 : vector<16x32xf32>
    %32 = arith.mulf %31, %31 : vector<16x32xf32>
    %cst_19 = arith.constant dense<0.000000e+00> : vector<16xf32>
    %33 = vector.multi_reduction <add>, %32, %cst_19 [1] : vector<16x32xf32> to vector<16xf32>
    %34 = vector.shape_cast %33 : vector<16xf32> to vector<16x1xf32>
    %cst_20 = arith.constant 3.200000e+01 : f32
    %35 = vector.broadcast %cst_20 : f32 to vector<16x1xf32>
    %36 = arith.divf %34, %35 : vector<16x1xf32>
    %37 = vector.broadcast %29 : vector<16x1xf32> to vector<16x32xf32>
    %38 = arith.subf %25, %37 : vector<16x32xf32>
    %cst_21 = arith.constant 9.99999996E-13 : f32
    %39 = vector.broadcast %cst_21 : f32 to vector<16x1xf32>
    %40 = arith.addf %36, %39 : vector<16x1xf32>
    %41 = math.rsqrt %40 : vector<16x1xf32>
    %42 = vector.broadcast %41 : vector<16x1xf32> to vector<16x32xf32>
    %43 = arith.mulf %38, %42 : vector<16x32xf32>
    %c0_22 = arith.constant 0 : index
    %c0_23 = arith.constant 0 : index
    %44 = vector.load %arg6[%c0_22, %c0_23] : memref<1x32xbf16, #tpu.memory_space<vmem>>, vector<1x32xbf16>
    %45 = arith.extf %44 : vector<1x32xbf16> to vector<1x32xf32>
    %46 = vector.broadcast %45 : vector<1x32xf32> to vector<16x32xf32>
    %47 = arith.mulf %43, %46 : vector<16x32xf32>
    %c0_24 = arith.constant 0 : index
    %c0_25 = arith.constant 0 : index
    %48 = vector.load %arg7[%c0_24, %c0_25] : memref<1x32xbf16, #tpu.memory_space<vmem>>, vector<1x32xbf16>
    %49 = arith.extf %48 : vector<1x32xbf16> to vector<1x32xf32>
    %50 = vector.broadcast %49 : vector<1x32xf32> to vector<16x32xf32>
    %51 = arith.addf %47, %50 : vector<16x32xf32>
    %52 = arith.truncf %51 : vector<16x32xf32> to vector<16x32xbf16>
    %c0_26 = arith.constant 0 : index
    %c0_27 = arith.constant 0 : index
    %53 = vector.load %arg8[%c0_26, %c0_27] : memref<16x32xbf16, #tpu.memory_space<vmem>>, vector<16x32xbf16>
    tpu.vector_store %arg8[%c0_26, %c0_27], %52 {strides = array<i32>} : memref<16x32xbf16, #tpu.memory_space<vmem>>, vector<16x32xbf16>,
    return
  }
  func.func @transform_0(%arg0: i32) -> (i32, i32) {
    %c0_i32 = arith.constant 0 : i32
    %c0_i32_0 = arith.constant 0 : i32
    return %arg0, %c0_i32 : i32, i32
  }
  func.func @transform_1(%arg0: i32) -> (i32, i32) {
    %c0_i32 = arith.constant 0 : i32
    %c0_i32_0 = arith.constant 0 : i32
    %c0_i32_1 = arith.constant 0 : i32
    return %c0_i32, %c0_i32_0 : i32, i32
  }
  func.func @transform_2(%arg0: i32) -> (i32, i32) {
    %c0_i32 = arith.constant 0 : i32
    %c0_i32_0 = arith.constant 0 : i32
    %c0_i32_1 = arith.constant 0 : i32
    return %c0_i32, %c0_i32_0 : i32, i32
  }
  func.func @transform_3(%arg0: i32) -> (i32, i32) {
    %c0_i32 = arith.constant 0 : i32
    %c0_i32_0 = arith.constant 0 : i32
    %c0_i32_1 = arith.constant 0 : i32
    return %c0_i32, %c0_i32_0 : i32, i32
  }
  func.func @transform_4(%arg0: i32) -> (i32, i32) {
    %c0_i32 = arith.constant 0 : i32
    %c0_i32_0 = arith.constant 0 : i32
    %c0_i32_1 = arith.constant 0 : i32
    return %c0_i32, %c0_i32_0 : i32, i32
  }
  func.func @transform_5(%arg0: i32) -> (i32, i32) {
    %c0_i32 = arith.constant 0 : i32
    %c0_i32_0 = arith.constant 0 : i32
    %c0_i32_1 = arith.constant 0 : i32
    return %c0_i32, %c0_i32_0 : i32, i32
  }
  func.func @transform_6(%arg0: i32) -> (i32, i32) {
    %c0_i32 = arith.constant 0 : i32
    %c0_i32_0 = arith.constant 0 : i32
    %c0_i32_1 = arith.constant 0 : i32
    return %c0_i32, %c0_i32_0 : i32, i32
  }
  func.func @transform_7(%arg0: i32) -> (i32, i32) {
    %c0_i32 = arith.constant 0 : i32
    %c0_i32_0 = arith.constant 0 : i32
    return %arg0, %c0_i32 : i32, i32
  }
}

module attributes {stable_mosaic.version = 11 : i64} {
  func.func @_linear_kernel(%arg0: i32, %arg1: memref<2x32xbf16, #tpu.memory_space<vmem>>, %arg2: memref<32x32xbf16, #tpu.memory_space<vmem>>, %arg3: memref<1x32xbf16, #tpu.memory_space<vmem>>, %arg4: memref<2x32xbf16, #tpu.memory_space<vmem>>) attributes {dimension_semantics = [#tpu.dimension_semantics<parallel>], iteration_bounds = array<i64: 1>, scalar_prefetch = 0 : i64, scratch_operands = 0 : i64, tpu.core_type = #tpu.core_type<tc>, window_params = [{transform_indices = @transform_0, window_bounds = array<i64: 2, 32>}, {pipeline_mode = #tpu.pipeline_mode<synchronous>, transform_indices = @transform_1, window_bounds = array<i64: 32, 32>}, {pipeline_mode = #tpu.pipeline_mode<synchronous>, transform_indices = @transform_2, window_bounds = array<i64: 1, 32>}, {transform_indices = @transform_3, window_bounds = array<i64: 2, 32>}]} {
    %c0 = arith.constant 0 : index
    %c0_0 = arith.constant 0 : index
    %0 = vector.load %arg1[%c0, %c0_0] : memref<2x32xbf16, #tpu.memory_space<vmem>>, vector<2x32xbf16>
    %c0_1 = arith.constant 0 : index
    %c0_2 = arith.constant 0 : index
    %1 = vector.load %arg2[%c0_1, %c0_2] : memref<32x32xbf16, #tpu.memory_space<vmem>>, vector<32x32xbf16>
    %cst = arith.constant dense<0.000000e+00> : vector<2x32xf32>
    %2 = tpu.matmul %0, %1, %cst {dimension_numbers = #tpu.dot_dimension_numbers<[1], [0], [0], [1], [0, 0, 1, 1], [], []>} : vector<2x32xbf16>, vector<32x32xbf16>, vector<2x32xf32> -> vector<2x32xf32>
    %c0_3 = arith.constant 0 : index
    %c0_4 = arith.constant 0 : index
    %3 = vector.load %arg3[%c0_3, %c0_4] : memref<1x32xbf16, #tpu.memory_space<vmem>>, vector<1x32xbf16>
    %4 = arith.extf %3 : vector<1x32xbf16> to vector<1x32xf32>
    %5 = vector.broadcast %4 : vector<1x32xf32> to vector<2x32xf32>
    %6 = arith.addf %2, %5 : vector<2x32xf32>
    %7 = math.tanh %6 : vector<2x32xf32>
    %8 = arith.truncf %7 : vector<2x32xf32> to vector<2x32xbf16>
    %c0_5 = arith.constant 0 : index
    %c0_6 = arith.constant 0 : index
    %9 = vector.load %arg4[%c0_5, %c0_6] : memref<2x32xbf16, #tpu.memory_space<vmem>>, vector<2x32xbf16>
    tpu.vector_store %arg4[%c0_5, %c0_6], %8 {strides = array<i32>} : memref<2x32xbf16, #tpu.memory_space<vmem>>, vector<2x32xbf16>,
    return
  }
  func.func @transform_0(%arg0: i32) -> (i32, i32) {
    %c0_i32 = arith.constant 0 : i32
    %c0_i32_0 = arith.constant 0 : i32
    return %arg0, %c0_i32 : i32, i32
  }
  func.func @transform_1(%arg0: i32) -> (i32, i32) {
    %c0_i32 = arith.constant 0 : i32
    %c0_i32_0 = arith.constant 0 : i32
    %c0_i32_1 = arith.constant 0 : i32
    return %c0_i32, %c0_i32_0 : i32, i32
  }
  func.func @transform_2(%arg0: i32) -> (i32, i32) {
    %c0_i32 = arith.constant 0 : i32
    %c0_i32_0 = arith.constant 0 : i32
    %c0_i32_1 = arith.constant 0 : i32
    return %c0_i32, %c0_i32_0 : i32, i32
  }
  func.func @transform_3(%arg0: i32) -> (i32, i32) {
    %c0_i32 = arith.constant 0 : i32
    %c0_i32_0 = arith.constant 0 : i32
    return %arg0, %c0_i32 : i32, i32
  }
}

</mosaic_0001>

<bundles_post_ra>
// kernel: bert_forward.10
= control target key start
LH: loop header
LB: loop body
LE: loop exit
PB: predicated region body
PF: predicated region fallthrough
CT: control target
= control target key end

     0   :  { %vm16_vm0 = vcmask 261120   ;;  %v46_v18 = vlaneseq  ;;  %vm68_vm1 = vcmask 257024   ;;  %s125_s0 = inlined_call_operand.vmem [shape: f32[16,32], index: 0, kind: input, shape index: {}]   ;;  %s126_s1 = inlined_call_operand.vmem [shape: bf16[1,32], index: 1, kind: input, shape index: {}]   ;;  %s127_s2 = inlined_call_operand.vmem [shape: bf16[1,32], index: 2, kind: input, shape index: {}]   ;;  %s128_s3 = inlined_call_operand.vmem [shape: bf16[16,32], index: 3, kind: output, shape index: {}]  }
   0x1   :  { %v14_v0 = vld [vmem:[%s125_s0] sm:$0xff]  ;;  %v15_v1 = vld [vmem:[%s125_s0 + $0x8] sm:$0xff] }
   0x2   :  { %v17_v2 = vsel %vm16_vm0, %v14_v0, 0.0  ;;  %v20_v3 = vsel %vm16_vm0, %v15_v1, 0.0  ;;  %v47_v21 = vshrl.u32 %v46_v18, 7  ;;  %v44_v22 = vld [vmem:[%s126_s1] sm:$0x1] }
   0x3   :  { %18 = vadd.xlane.f32.xlu0 %v17_v2  ;;  %v52_v23 = vld [vmem:[%s127_s2] sm:$0x1]  ;;  %v45_v24 = vunpack.c.l.bf16 %v44_v22 }
   0x4   :  { %v48_v25 = vsub.s32 0, %v47_v21  ;;  %v53_v26 = vunpack.c.l.bf16 %v52_v23 }
   0x6   :  { %v49_v27 = vrot.slane %v45_v24, %v48_v25  ;;  %v57_v29 = vrot.slane %v53_v26, %v48_v25 }
   0x7   :  { %21 = vadd.xlane.f32.xlu0 %v20_v3 }
  0x8c   :  { %v19_v4 = vpop.xlane.xlu0 %18 }
  0x8d   :  { %v24_v5 = vmul.f32 0.03125, %v19_v4 }
  0x8f   :  { %v26_v6 = vsub.f32 %v14_v0, %v24_v5 }
  0x90   :  { %v22_v7 = vpop.xlane.xlu0 %21 }
  0x91   :  { %v25_v8 = vmul.f32 0.03125, %v22_v7  ;;  %v28_v9 = vmul.f32 %v26_v6, %v26_v6 }
  0x93   :  { %v27_v10 = vsub.f32 %v15_v1, %v25_v8  ;;  %v30_v11 = vsel %vm16_vm0, %v28_v9, 0.0 }
  0x94   :  { %31 = vadd.xlane.f32.xlu1 %v30_v11 }
  0x95   :  { %v29_v12 = vmul.f32 %v27_v10, %v27_v10 }
  0x97   :  { %v33_v13 = vsel %vm16_vm0, %v29_v12, 0.0 }
  0x98   :  { %34 = vadd.xlane.f32.xlu1 %v33_v13 }
 0x11d   :  { %v32_v14 = vpop.xlane.xlu1 %31 }
 0x11e   :  { %v36_v15 = vmul.f32 0.03125, %v32_v14 }
 0x120   :  { %v38_v16 = vadd.f32 1e-12, %v36_v15 }
 0x121   :  { %v35_v17 = vpop.xlane.xlu1 %34 }
 0x122   :  { %79 = vrsqrt.f32 %v38_v16  ;;  %v37_v19 = vmul.f32 0.03125, %v35_v17 }
 0x124   :  { %v39_v20 = vadd.f32 1e-12, %v37_v19 }
 0x126   :  { %81 = vrsqrt.f32 %v39_v20 }
 0x12f   :  { %v80_v28 = vpop.eup %79 }
 0x130   :  { %v42_v30 = vmul.f32 %v80_v28, %v26_v6 }
 0x132   :  { %v50_v31 = vmul.f32 %v49_v27, %v42_v30 }
 0x133   :  { %v82_v32 = vpop.eup %81 }
 0x134   :  { %v58_v33 = vadd.f32 %v57_v29, %v50_v31  ;;  %v43_v34 = vmul.f32 %v82_v32, %v27_v10 }
 0x136   :  { %v77_v35 = vpack.c.bf16 %v58_v33, %v58_v33  ;;  %v51_v36 = vmul.f32 %v49_v27, %v43_v34 }
 0x138   :  { %69 = vst.msk [vmem:[%s128_s3] sm:$0xf] %vm68_vm1, %v77_v35  ;;  %v59_v37 = vadd.f32 %v57_v29, %v51_v36 }
 0x13a   :  { %v78_v38 = vpack.c.bf16 %v59_v37, %v59_v37 }
 0x13c   :  { %70 = vst.msk [vmem:[%s128_s3 + $0x4] sm:$0xf] %vm68_vm1, %v78_v38 }

// kernel: bert_forward.11
= control target key start
LH: loop header
LB: loop body
LE: loop exit
PB: predicated region body
PF: predicated region fallthrough
CT: control target
= control target key end

     0   :  { %v157_v0 = vmov 0.0   ;;  %vm158_vm0 = vmmov 0   ;;  %vm47_vm1 = vcmask 261120   ;;  %v26_v4 = vlaneseq  ;;  %s159_s26 = smov 64   ;;  %s160_s27 = smov 96   ;;  %s227_s1 = inlined_call_operand.vmem [shape: bf16[32,96], index: 1, kind: input, shape index: {}]   ;;  %s228_s0 = inlined_call_operand.vmem [shape: bf16[16,32], index: 0, kind: input, shape index: {}]   ;;  %s229_s2 = inlined_call_operand.vmem [shape: bf16[1,96], index: 2, kind: input, shape index: {}]   ;;  %s230_s3 = inlined_call_operand.vmem [shape: bf16[16,32], index: 3, kind: output, shape index: {0}]   ;;  %s231_s5 = inlined_call_operand.vmem [shape: bf16[16,32], index: 5, kind: output, shape index: {2}]   ;;  %s232_s4 = inlined_call_operand.vmem [shape: bf16[16,32], index: 4, kind: output, shape index: {1}]  }
   0x1   :  { %142 = vmatprep.subr.bf16.mxu0 %v157_v0  ;;  %v154_v1 = vld [vmem:[%s227_s1 + $0x8] sm:$0xff]   ;;  %146 = vmatprep.mubr.msk.bf16.mxu0 %vm158_vm0, %v157_v0  ;;  %v155_v2 = vld [vmem:[%s227_s1] sm:$0xff]   ;;  %vm100_vm2 = vcmask 257024  }
   0x2   :  { %143 = vmatpush3.bf16.msra.mxu0 %v154_v1  ;;  %v156_v3 = vld [vmem:[%s228_s0] sm:$0xff]   ;;  %v27_v5 = vshrl.u32 %v26_v4, 7 }
   0x3   :  { %144 = vmatprep.subr.bf16.mxu0 %v157_v0  ;;  %v24_v6 = vld [vmem:[%s229_s2] sm:$0x1] }
   0x4   :  { %v25_v7 = vunpack.c.l.bf16 %v24_v6  ;;  %v28_v8 = vsub.s32 0, %v27_v5 }
   0x6   :  { %145 = vmatpush3.bf16.msra.mxu0 %v155_v2  ;;  %v29_v9 = vrot.slane %v25_v7, %v28_v8 }
   0x9   :  { %147 = vmatmul.mubr.msk.bf16.vlgmr.msra.gmra.mxu0 %vm47_vm1, %v156_v3 }
  0xc9   :  { %v85_v10 = vpop.f32.mrf.mxu0 }
  0xca   :  { %v86_v11 = vadd.f32 %v85_v10, %v29_v9 }
  0xcb   :  { %v148_v12 = vpop.f32.mrf.mxu0 }
  0xcc   :  { %v137_v13 = vpack.c.bf16 %v86_v11, %v86_v11 }
  0xcd   :  { %v88_v14 = vpop.f32.mrf.mxu0 }
  0xce   :  { %101 = vst.msk [vmem:[%s230_s3] sm:$0xf] %vm100_vm2, %v137_v13  ;;  %v89_v15 = vadd.f32 %v88_v14, %v29_v9  ;;  %111 = vrot.lane.b32.xlu1 %v137_v13, %s159_s26  ;;  %103 = vrot.lane.b32.xlu0 %v137_v13, %s160_s27 }
  0xcf   :  { %v149_v16 = vpop.f32.mrf.mxu0 }
  0xd0   :  { %v138_v17 = vpack.c.bf16 %v89_v15, %v89_v15 }
  0xd2   :  { %102 = vst.msk [vmem:[%s230_s3 + $0x4] sm:$0xf] %vm100_vm2, %v138_v17  ;;  %113 = vrot.lane.b32.xlu1 %v138_v17, %s159_s26  ;;  %105 = vrot.lane.b32.xlu0 %v138_v17, %s160_s27 }
 0x140   :  { %v112_v18 = vpop.permute.xlu1 %111  ;;  %v104_v19 = vpop.permute.xlu0 %103 }
 0x141   :  { %117 = vst.msk [vmem:[%s231_s5] sm:$0xf] %vm100_vm2, %v112_v18  ;;  %109 = vst.msk [vmem:[%s232_s4] sm:$0xf] %vm100_vm2, %v104_v19 }
 0x144   :  { %v114_v20 = vpop.permute.xlu1 %113  ;;  %v106_v21 = vpop.permute.xlu0 %105 }
 0x145   :  { %118 = vst.msk [vmem:[%s231_s5 + $0x4] sm:$0xf] %vm100_vm2, %v114_v20  ;;  %110 = vst.msk [vmem:[%s232_s4 + $0x4] sm:$0xf] %vm100_vm2, %v106_v21 }

// kernel: bert_forward.13
= control target key start
LH: loop header
LB: loop body
LE: loop exit
PB: predicated region body
PF: predicated region fallthrough
CT: control target
= control target key end

     0   :  { %v194_v0 = vmov 0.0   ;;  %vm195_vm0 = vmmov 0   ;;  %vm53_vm1 = vcmask 261120   ;;  %v32_v4 = vlaneseq  ;;  %s263_s1 = inlined_call_operand.vmem [shape: bf16[32,32], index: 1, kind: input, shape index: {}]   ;;  %s264_s0 = inlined_call_operand.vmem [shape: bf16[16,32], index: 0, kind: input, shape index: {}]   ;;  %s265_s2 = inlined_call_operand.vmem [shape: bf16[1,32], index: 2, kind: input, shape index: {}]   ;;  %s266_s3 = inlined_call_operand.vmem [shape: bf16[16,32], index: 3, kind: input, shape index: {}]   ;;  %s267_s4 = inlined_call_operand.vmem [shape: bf16[1,32], index: 4, kind: input, shape index: {}]   ;;  %s268_s5 = inlined_call_operand.vmem [shape: bf16[1,32], index: 5, kind: input, shape index: {}]   ;;  %s269_s6 = inlined_call_operand.vmem [shape: bf16[16,32], index: 6, kind: output, shape index: {}]  }
   0x1   :  { %177 = vmatprep.subr.bf16.mxu0 %v194_v0  ;;  %v187_v1 = vld [vmem:[%s263_s1 + $0x8] sm:$0xff]   ;;  %181 = vmatprep.mubr.msk.bf16.mxu0 %vm195_vm0, %v194_v0  ;;  %v188_v2 = vld [vmem:[%s263_s1] sm:$0xff]   ;;  %vm155_vm2 = vcmask 257024  }
   0x2   :  { %178 = vmatpush3.bf16.msra.mxu0 %v187_v1  ;;  %v189_v3 = vld [vmem:[%s264_s0] sm:$0xff]   ;;  %v33_v5 = vshrl.u32 %v32_v4, 7 }
   0x3   :  { %179 = vmatprep.subr.bf16.mxu0 %v194_v0  ;;  %v30_v6 = vld [vmem:[%s265_s2] sm:$0x1] }
   0x4   :  { %v31_v7 = vunpack.c.l.bf16 %v30_v6  ;;  %v34_v8 = vsub.s32 0, %v33_v5  ;;  %v171_v9 = vld [vmem:[%s266_s3] sm:$0xff]  }
   0x5   :  { %v172_v11 = vunpack.c.l.bf16 %v171_v9  ;;  %v173_v16 = vunpack.c.h.bf16 %v171_v9  ;;  %v131_v39 = vld [vmem:[%s267_s4] sm:$0x1] }
   0x6   :  { %180 = vmatpush3.bf16.msra.mxu0 %v188_v2  ;;  %v35_v10 = vrot.slane %v31_v7, %v34_v8  ;;  %v139_v40 = vld [vmem:[%s268_s5] sm:$0x1]  ;;  %v132_v41 = vunpack.c.l.bf16 %v131_v39 }
   0x7   :  { %v140_v42 = vunpack.c.l.bf16 %v139_v40 }
   0x8   :  { %v136_v43 = vrot.slane %v132_v41, %v34_v8 }
   0x9   :  { %182 = vmatmul.mubr.msk.bf16.vlgmr.msra.gmra.mxu0 %vm53_vm1, %v189_v3  ;;  %v144_v45 = vrot.slane %v140_v42, %v34_v8 }
  0xc9   :  { %v91_v12 = vpop.f32.mrf.mxu0 }
  0xca   :  { %v92_v13 = vadd.f32 %v91_v12, %v35_v10 }
  0xcb   :  { %v183_v14 = vpop.f32.mrf.mxu0 }
  0xcc   :  { %v102_v15 = vadd.f32 %v172_v11, %v92_v13 }
  0xcd   :  { %v94_v17 = vpop.f32.mrf.mxu0 }
  0xce   :  { %v95_v18 = vadd.f32 %v94_v17, %v35_v10  ;;  %v104_v19 = vsel %vm53_vm1, %v102_v15, 0.0 }
  0xcf   :  { %105 = vadd.xlane.f32.xlu0 %v104_v19  ;;  %v184_v20 = vpop.f32.mrf.mxu0 }
  0xd0   :  { %v103_v21 = vadd.f32 %v173_v16, %v95_v18 }
  0xd2   :  { %v107_v22 = vsel %vm53_vm1, %v103_v21, 0.0 }
  0xd3   :  { %108 = vadd.xlane.f32.xlu0 %v107_v22 }
 0x158   :  { %v106_v23 = vpop.xlane.xlu0 %105 }
 0x159   :  { %v111_v24 = vmul.f32 0.03125, %v106_v23 }
 0x15b   :  { %v113_v25 = vsub.f32 %v102_v15, %v111_v24 }
 0x15c   :  { %v109_v26 = vpop.xlane.xlu0 %108 }
 0x15d   :  { %v112_v27 = vmul.f32 0.03125, %v109_v26  ;;  %v115_v28 = vmul.f32 %v113_v25, %v113_v25 }
 0x15f   :  { %v114_v29 = vsub.f32 %v103_v21, %v112_v27  ;;  %v117_v30 = vsel %vm53_vm1, %v115_v28, 0.0 }
 0x160   :  { %118 = vadd.xlane.f32.xlu1 %v117_v30 }
 0x161   :  { %v116_v31 = vmul.f32 %v114_v29, %v114_v29 }
 0x163   :  { %v120_v32 = vsel %vm53_vm1, %v116_v31, 0.0 }
 0x164   :  { %121 = vadd.xlane.f32.xlu1 %v120_v32 }
 0x1e9   :  { %v119_v33 = vpop.xlane.xlu1 %118 }
 0x1ea   :  { %v123_v34 = vmul.f32 0.03125, %v119_v33 }
 0x1ec   :  { %v125_v35 = vadd.f32 1e-12, %v123_v34 }
 0x1ed   :  { %v122_v36 = vpop.xlane.xlu1 %121 }
 0x1ee   :  { %190 = vrsqrt.f32 %v125_v35  ;;  %v124_v37 = vmul.f32 0.03125, %v122_v36 }
 0x1f0   :  { %v126_v38 = vadd.f32 1e-12, %v124_v37 }
 0x1f2   :  { %192 = vrsqrt.f32 %v126_v38 }
 0x1fb   :  { %v191_v44 = vpop.eup %190 }
 0x1fc   :  { %v129_v46 = vmul.f32 %v191_v44, %v113_v25 }
 0x1fe   :  { %v137_v47 = vmul.f32 %v136_v43, %v129_v46 }
 0x1ff   :  { %v193_v48 = vpop.eup %192 }
 0x200   :  { %v145_v49 = vadd.f32 %v144_v45, %v137_v47  ;;  %v130_v50 = vmul.f32 %v193_v48, %v114_v29 }
 0x202   :  { %v168_v51 = vpack.c.bf16 %v145_v49, %v145_v49  ;;  %v138_v52 = vmul.f32 %v136_v43, %v130_v50 }
 0x204   :  { %156 = vst.msk [vmem:[%s269_s6] sm:$0xf] %vm155_vm2, %v168_v51  ;;  %v146_v53 = vadd.f32 %v144_v45, %v138_v52 }
 0x206   :  { %v169_v54 = vpack.c.bf16 %v146_v53, %v146_v53 }
 0x208   :  { %157 = vst.msk [vmem:[%s269_s6 + $0x4] sm:$0xf] %vm155_vm2, %v169_v54 }

// kernel: bert_forward.12
= control target key start
LH: loop header
LB: loop body
LE: loop exit
PB: predicated region body
PF: predicated region fallthrough
CT: control target
= control target key end

     0   :  { %s994_s12 = smov 0   ;;  %s996_s13 = smov 0   ;;  %s1102_s0 = inlined_call_operand.vmem [shape: bf16[2,8,32], index: 0, kind: input, shape index: {}]   ;;  %s1103_s1 = inlined_call_operand.vmem [shape: bf16[2,8,32], index: 1, kind: input, shape index: {}]   ;;  %s1104_s2 = inlined_call_operand.vmem [shape: bf16[2,8,32], index: 2, kind: input, shape index: {}]   ;;  %s1105_s3 = inlined_call_operand.vmem [shape: bf16[2,8,32], index: 3, kind: output, shape index: {}]  }
   0x1   :  { %s998_s14 = smov 0  }
   0x2 LB: > { %s25_s15 = sadd.s32 1, %s960_s13  ;;  %p809_p0 = scmp.ge.s32.totalorder %s964_s14, 1  ;;  %s964_s14 = sphi %s998_s14, %s13_s14   ;;  %s960_s13 = sphi %s996_s13, %s1107_s13   ;;  %s956_s12 = sphi %s994_s12, %s1106_s12  }
   0x3   : > { %p27_p1 = scmp.ge.s32.totalorder %s25_s15, 2  ;;  %p173_p2 = scmp.lt.s32.totalorder %s964_s14, 3 }
   0x5   : > { %s1109_s15 = smov (%p27_p1, %s25_s15), 0  ;;  %p174_p3 = pnand %p809_p0, %p173_p2 }
   0x6   : > { %p209_p4 = scmp.lt.s32.totalorder (!%p174_p3), %s956_s12, 1  ;;  %s968_s23 = smov (!%p174_p3), 120  }
   0x7   : > { %177 = sbr.rel (%p174_p3) target bundleno = 1422 (0x58e), region = 32  ;;  %s969_s24 = smov (!%p174_p3), 112  }
   0x8   : > { %s970_s25 = smov (!%p174_p3), 104   ;;  %s971_s29 = smov (!%p174_p3), 8  }
   0x9   : > { %s972_s30 = smov (!%p174_p3), 16   ;;  %s973_s4 = smov (!%p174_p3), 24  }
   0xc   : > { %v966_v0 = vmov 0.0   ;;  %vm967_vm0 = vmmov 0   ;;  %s1111_s12 = smov (!%p209_p4, %s956_s12), 1  ;;  %vm235_vm1 = vcmask 64512   ;;  %vm298_vm2 = vcmask 1043456  }
   0xd   : > { %843 = vmatprep.subr.bf16.mxu0 %v966_v0  ;;  %845 = vmatprep.mubr.msk.bf16.mxu0 %vm967_vm0, %v966_v0  ;;  %s1018_s16 = sshll.u32 %s1111_s12, 2  ;;  %vm467_vm3 = vcmask 130112   ;;  %vm584_vm4 = vcmask 195712   ;;  %vm701_vm5 = vcmask 261312   ;;  %vm705_vm6 = vcmask 257024  }
   0xe   : > { %849 = vmatprep.subr.bf16.mxu1 %v966_v0  ;;  %851 = vmatprep.mubr.msk.bf16.mxu1 %vm967_vm0, %v966_v0  ;;  %s219_s19 = scalar_lea.vmem %s1103_s1, %s1018_s16  ;;  %s215_s22 = scalar_lea.vmem %s1102_s0, %s1018_s16 }
   0xf   : > { %v233_v1 = vld [vmem:[%s219_s19] sm:$0xf]  ;;  %s223_s28 = scalar_lea.vmem %s1104_s2, %s1018_s16  ;;  %s230_s7 = scalar_lea.vmem %s1105_s3, %s1018_s16 }
  0x10   : > { %v240_v2 = vsel %vm235_vm1, %v233_v1, 0  ;;  %v232_v3 = vld [vmem:[%s215_s22] sm:$0xf]  ;;  %v817_v10 = vcombine.low %v233_v1, %v233_v1 }
  0x11   : > { %844 = vmatpush3.bf16.xpose.msra.mxu0 %v240_v2  ;;  %v816_v11 = vcombine.low %v232_v3, %v232_v3  ;;  %v1044_v17 = vld [vmem:[%s223_s28] sm:$0xf] }
  0x12   : > { %861 = vmatprep.subr.bf16.mxu0 %v966_v0  ;;  %351 = vrot.lane.b32.xlu1 %v817_v10, %s968_s23  ;;  %v300_v18 = vsel %vm298_vm2, %v1044_v17, 0  ;;  %v819_v1 = vcombine.low %v1044_v17, %v1044_v17 }
  0x13   : > { %850 = vmatpush3.bf16.msra.mxu1 %v300_v18 }
  0x14   : > { %855 = vmatprep.subr.bf16.mxu1 %v966_v0 }
  0x16   : > { %346 = vrot.lane.b32.xlu1 %v816_v11, %s968_s23 }
  0x18   : > { %846 = vmatmul.mubr.msk.bf16.vlgmr.msra.gmra.mxu0 %vm235_vm1, %v232_v3 }
  0x19   : > { %863 = vmatprep.mubr.msk.bf16.mxu0 %vm967_vm0, %v966_v0 }
  0x1a   : > { %469 = vrot.lane.b32.xlu1 %v816_v11, %s969_s24 }
  0x1e   : > { %588 = vrot.lane.b32.xlu1 %v817_v10, %s970_s25 }
  0x22   : > { %586 = vrot.lane.b32.xlu1 %v816_v11, %s970_s25 }
  0x84   : > { %v352_v21 = vpop.permute.xlu1 %351 }
  0x85   : > { %v357_v23 = vsel %vm235_vm1, %v352_v21, 0 }
  0x88   : > { %v347_v25 = vpop.permute.xlu1 %346 }
  0x8c   : > { %v470_v27 = vpop.permute.xlu1 %469 }
  0x90   : > { %v589_v29 = vpop.permute.xlu1 %588 }
  0x91   : > { %v594_v30 = vsel %vm235_vm1, %v589_v29, 0 }
  0x94   : > { %v587_v31 = vpop.permute.xlu1 %586 }
  0xd8   : > { %v276_v4 = vpop.f32.mrf.mxu0 }
  0xd9   : > { %v282_v5 = vmul.f32 0.35355338, %v276_v4 }
  0xda   : > { %v847_v6 = vpop.f32.mrf.mxu0 }
  0xdb   : > { %v283_v7 = vsel %vm235_vm1, %v282_v5, -inf }
  0xdc   : > { %284 = vmax.xlane.f32.xlu0 %v283_v7  ;;  %v279_v8 = vpop.f32.mrf.mxu0 }
  0xde   : > { %v848_v9 = vpop.f32.mrf.mxu0 }
 0x165   : > { %v285_v12 = vpop.xlane.xlu0 %284 }
 0x166   : > { %v286_v13 = vsub.f32 %v282_v5, %v285_v12 }
 0x168   : > { %v287_v14 = vmul.f32 1.442695, %v286_v13 }
 0x16a   : > { %926 = vpow2.f32 %v287_v14 }
 0x177   : > { %v927_v15 = vpop.eup %926 }
 0x178   : > { %v289_v16 = vsel %vm235_vm1, %v927_v15, 0.0 }
 0x179   : > { %290 = vadd.xlane.f32.xlu0 %v289_v16 }
 0x18f   : > { %471 = vrot.lane.b32.xlu0 %v817_v10, %s969_s24 }
 0x202   : > { %v291_v19 = vpop.xlane.xlu0 %290 }
 0x203   : > { %928 = vrcp.f32 %v291_v19 }
 0x206   : > { %v472_v26 = vpop.permute.xlu0 %471 }
 0x207   : > { %v477_v28 = vsel %vm235_vm1, %v472_v26, 0 }
 0x210   : > { %v929_v20 = vpop.eup %928 }
 0x211   : > { %v293_v22 = vmul.f32 %v929_v20, %v927_v15 }
 0x213   : > { %v294_v24 = vpack.c.bf16 %v293_v22, %v293_v22 }
 0x215   : > { %852 = vmatmul.mubr.msk.bf16.vlgmr.msra.gmra.mxu1 %vm235_vm1, %v294_v24 }
 0x216   : > { %856 = vmatpush3.bf16.xpose.msra.mxu1 %v357_v23  ;;  %857 = vmatprep.mubr.msk.bf16.mxu1 %vm967_vm0, %v966_v0 }
 0x217   : > { %867 = vmatprep.subr.bf16.mxu1 %v966_v0 }
 0x21d   : > { %858 = vmatmul.mubr.msk.bf16.vlgmr.msra.gmra.mxu1 %vm235_vm1, %v347_v25 }
 0x21e   : > { %868 = vmatpush3.bf16.xpose.msra.mxu1 %v477_v28  ;;  %869 = vmatprep.mubr.msk.bf16.mxu1 %vm967_vm0, %v966_v0 }
 0x21f   : > { %879 = vmatprep.subr.bf16.mxu1 %v966_v0 }
 0x225   : > { %870 = vmatmul.mubr.msk.bf16.vlgmr.msra.gmra.mxu1 %vm235_vm1, %v470_v27 }
 0x226   : > { %880 = vmatpush3.bf16.xpose.msra.mxu1 %v594_v30  ;;  %881 = vmatprep.mubr.msk.bf16.mxu1 %vm967_vm0, %v966_v0 }
 0x22d   : > { %882 = vmatmul.mubr.msk.bf16.vlgmr.msra.gmra.mxu1 %vm235_vm1, %v587_v31 }
 0x2d5   : > { %v336_v32 = vpop.f32.mrf.mxu1 }
 0x2d6   : > { %342 = vst.msk [vmem:[#allocation2] sm:$0xff] %vm235_vm1, %v336_v32 }
 0x2d7   : > { %v853_v33 = vpop.f32.mrf.mxu1 }
 0x2d9   : > { %v339_v34 = vpop.f32.mrf.mxu1 }
 0x2db   : > { %v854_v35 = vpop.f32.mrf.mxu1 }
 0x2dd   : > { %v393_v36 = vpop.f32.mrf.mxu1 }
 0x2de   : > { %v399_v37 = vmul.f32 0.35355338, %v393_v36 }
 0x2df   : > { %v859_v38 = vpop.f32.mrf.mxu1 }
 0x2e0   : > { %v400_v39 = vsel %vm235_vm1, %v399_v37, -inf }
 0x2e1   : > { %401 = vmax.xlane.f32.xlu1 %v400_v39  ;;  %v396_v40 = vpop.f32.mrf.mxu1 }
 0x2e3   : > { %v860_v41 = vpop.f32.mrf.mxu1 }
 0x2e5   : > { %v513_v42 = vpop.f32.mrf.mxu1 }
 0x2e6   : > { %v519_v43 = vmul.f32 0.35355338, %v513_v42 }
 0x2e7   : > { %v871_v44 = vpop.f32.mrf.mxu1 }
 0x2e8   : > { %v520_v45 = vsel %vm235_vm1, %v519_v43, -inf }
 0x2e9   : > { %521 = vmax.xlane.f32.xlu0 %v520_v45  ;;  %v516_v46 = vpop.f32.mrf.mxu1 }
 0x2eb   : > { %v872_v47 = vpop.f32.mrf.mxu1 }
 0x2ed   : > { %v630_v48 = vpop.f32.mrf.mxu1 }
 0x2ee   : > { %v636_v49 = vmul.f32 0.35355338, %v630_v48 }
 0x2ef   : > { %v883_v50 = vpop.f32.mrf.mxu1 }
 0x2f0   : > { %v637_v51 = vsel %vm235_vm1, %v636_v49, -inf }
 0x2f1   : > { %638 = vmax.xlane.f32.xlu1 %v637_v51  ;;  %v633_v52 = vpop.f32.mrf.mxu1 }
 0x2f3   : > { %v884_v53 = vpop.f32.mrf.mxu1 }
 0x36a   : > { %v402_v54 = vpop.xlane.xlu1 %401 }
 0x36b   : > { %v403_v55 = vsub.f32 %v399_v37, %v402_v54 }
 0x36d   : > { %v404_v56 = vmul.f32 1.442695, %v403_v55 }
 0x36f   : > { %930 = vpow2.f32 %v404_v56 }
 0x372   : > { %v522_v57 = vpop.xlane.xlu0 %521 }
 0x373   : > { %v523_v58 = vsub.f32 %v519_v43, %v522_v57 }
 0x375   : > { %v524_v59 = vmul.f32 1.442695, %v523_v58 }
 0x377   : > { %932 = vpow2.f32 %v524_v59 }
 0x37a   : > { %v639_v2 = vpop.xlane.xlu1 %638 }
 0x37b   : > { %v640_v3 = vsub.f32 %v636_v49, %v639_v2 }
 0x37c   : > { %v931_v60 = vpop.eup %930 }
 0x37d   : > { %v406_v61 = vsel %vm235_vm1, %v931_v60, 0.0  ;;  %v641_v4 = vmul.f32 1.442695, %v640_v3 }
 0x37e   : > { %407 = vadd.xlane.f32.xlu1 %v406_v61 }
 0x37f   : > { %934 = vpow2.f32 %v641_v4 }
 0x384   : > { %v933_v62 = vpop.eup %932 }
 0x385   : > { %v526_v63 = vsel %vm235_vm1, %v933_v62, 0.0 }
 0x386   : > { %527 = vadd.xlane.f32.xlu0 %v526_v63 }
 0x38c   : > { %v935_v5 = vpop.eup %934 }
 0x38d   : > { %v643_v6 = vsel %vm235_vm1, %v935_v5, 0.0 }
 0x38f   : > { %532 = vrot.lane.b32.xlu1 %v819_v1, %s969_s24 }
 0x39c   : > { %415 = vrot.lane.b32.xlu0 %v819_v1, %s968_s23 }
 0x3b3   : > { %644 = vadd.xlane.f32.xlu1 %v643_v6 }
 0x3c4   : > { %649 = vrot.lane.b32.xlu1 %v819_v1, %s970_s25 }
 0x407   : > { %v408_v7 = vpop.xlane.xlu1 %407 }
 0x408   : > { %936 = vrcp.f32 %v408_v7 }
 0x40b   : > { %v533_v13 = vpop.permute.xlu1 %532 }
 0x40c   : > { %v538_v15 = vsel %vm298_vm2, %v533_v13, 0 }
 0x40f   : > { %v528_v8 = vpop.xlane.xlu0 %527 }
 0x410   : > { %938 = vrcp.f32 %v528_v8 }
 0x413   : > { %v416_v9 = vpop.permute.xlu0 %415 }
 0x414   : > { %v421_v10 = vsel %vm298_vm2, %v416_v9, 0 }
 0x415   : > { %v937_v11 = vpop.eup %936  ;;  %862 = vmatpush3.bf16.msra.mxu0 %v421_v10 }
 0x416   : > { %873 = vmatprep.subr.bf16.mxu0 %v966_v0  ;;  %v410_v12 = vmul.f32 %v937_v11, %v931_v60 }
 0x418   : > { %v411_v14 = vpack.c.bf16 %v410_v12, %v410_v12 }
 0x41a   : > { %864 = vmatmul.mubr.msk.bf16.vlgmr.msra.gmra.mxu0 %vm235_vm1, %v411_v14 }
 0x41b   : > { %874 = vmatpush3.bf16.msra.mxu0 %v538_v15  ;;  %875 = vmatprep.mubr.msk.bf16.mxu0 %vm967_vm0, %v966_v0 }
 0x41c   : > { %885 = vmatprep.subr.bf16.mxu0 %v966_v0 }
 0x41d   : > { %v939_v16 = vpop.eup %938 }
 0x41e   : > { %v530_v17 = vmul.f32 %v939_v16, %v933_v62 }
 0x420   : > { %v531_v18 = vpack.c.bf16 %v530_v17, %v530_v17 }
 0x422   : > { %876 = vmatmul.mubr.msk.bf16.vlgmr.msra.gmra.mxu0 %vm235_vm1, %v531_v18 }
 0x423   : > { %887 = vmatprep.mubr.msk.bf16.mxu0 %vm967_vm0, %v966_v0 }
 0x43c   : > { %v645_v19 = vpop.xlane.xlu1 %644 }
 0x43d   : > { %940 = vrcp.f32 %v645_v19 }
 0x440   : > { %v650_v20 = vpop.permute.xlu1 %649 }
 0x441   : > { %v655_v21 = vsel %vm298_vm2, %v650_v20, 0 }
 0x442   : > { %886 = vmatpush3.bf16.msra.mxu0 %v655_v21 }
 0x44a   : > { %v941_v22 = vpop.eup %940 }
 0x44b   : > { %v647_v23 = vmul.f32 %v941_v22, %v935_v5 }
 0x44d   : > { %v648_v24 = vpack.c.bf16 %v647_v23, %v647_v23 }
 0x44f   : > { %888 = vmatmul.mubr.msk.bf16.vlgmr.msra.gmra.mxu0 %vm235_vm1, %v648_v24 }
 0x4da   : > { %v457_v25 = vpop.f32.mrf.mxu0 }
 0x4db   : > { %464 = vrot.lane.b32.xlu0 %v457_v25, %s971_s29 }
 0x4dc   : > { %v865_v26 = vpop.f32.mrf.mxu0 }
 0x4de   : > { %v460_v27 = vpop.f32.mrf.mxu0 }
 0x4e0   : > { %v866_v28 = vpop.f32.mrf.mxu0 }
 0x4e2   : > { %v574_v29 = vpop.f32.mrf.mxu0 }
 0x4e3   : > { %581 = vrot.lane.b32.xlu1 %v574_v29, %s972_s30 }
 0x4e4   : > { %v877_v0 = vpop.f32.mrf.mxu0 }
 0x4e6   : > { %v577_v30 = vpop.f32.mrf.mxu0 }
 0x4e8   : > { %v878_v31 = vpop.f32.mrf.mxu0 }
 0x50f   : > { %v691_v32 = vpop.f32.mrf.mxu0 }
 0x510   : > { %698 = vrot.lane.b32.xlu0 %v691_v32, %s973_s4 }
 0x511   : > { %v889_v33 = vpop.f32.mrf.mxu0 }
 0x513   : > { %v694_v34 = vpop.f32.mrf.mxu0 }
 0x515   : > { %v890_v35 = vpop.f32.mrf.mxu0 }
 0x54d   : > { %v465_v36 = vpop.permute.xlu0 %464 }
 0x54e   : > { %468 = vst.msk [vmem:[#allocation2] sm:$0xff] %vm467_vm3, %v465_v36 }
 0x555   : > { %v582_v37 = vpop.permute.xlu1 %581 }
 0x556   : > { %585 = vst.msk [vmem:[#allocation2] sm:$0xff] %vm584_vm4, %v582_v37 }
 0x582   : > { %v699_v38 = vpop.permute.xlu0 %698 }
 0x583   : > { %702 = vst.msk [vmem:[#allocation2] sm:$0xff] %vm701_vm5, %v699_v38 }
 0x58a   : > { %v703_v39 = vld [vmem:[#allocation2] sm:$0xff] }
 0x58b   : > { %v704_v40 = vpack.c.bf16 %v703_v39, %v703_v39 }
 0x58d   : > { %706 = vst.msk [vmem:[%s230_s7] sm:$0xf] %vm705_vm6, %v704_v40 }
 0x58e PF: > { %s13_s14 = sadd.s32 1, %s964_s14   ;;  %s1106_s12 = smov %s960_s13 }
 0x58f   : > { %p10_p5 = scmp.ge.s32.totalorder %s13_s14, 4   ;;  %s1107_s13 = smov %s1109_s15 }
 0x591   :  { %12 = sbr.rel (!%p10_p5) target bundleno = 2 (0x2), region = 68 }

// kernel: bert_forward.14
= control target key start
LH: loop header
LB: loop body
LE: loop exit
PB: predicated region body
PF: predicated region fallthrough
CT: control target
= control target key end

     0   :  { %v339_v0 = vmov 0.0   ;;  %vm340_vm0 = vmmov 0   ;;  %vm56_vm1 = vcmask 261120   ;;  %v35_v8 = vlaneseq  ;;  %s436_s1 = inlined_call_operand.vmem [shape: bf16[32,64], index: 1, kind: input, shape index: {}]   ;;  %s437_s0 = inlined_call_operand.vmem [shape: bf16[16,32], index: 0, kind: input, shape index: {}]   ;;  %s438_s3 = inlined_call_operand.vmem [shape: bf16[64,32], index: 3, kind: input, shape index: {}]   ;;  %s439_s2 = inlined_call_operand.vmem [shape: bf16[1,64], index: 2, kind: input, shape index: {}]   ;;  %s440_s4 = inlined_call_operand.vmem [shape: bf16[1,32], index: 4, kind: input, shape index: {}]   ;;  %s441_s5 = inlined_call_operand.vmem [shape: bf16[1,32], index: 5, kind: input, shape index: {}]   ;;  %s442_s6 = inlined_call_operand.vmem [shape: bf16[1,32], index: 6, kind: input, shape index: {}]   ;;  %s443_s7 = inlined_call_operand.vmem [shape: bf16[16,32], index: 7, kind: output, shape index: {}]  }
   0x1   :  { %300 = vmatprep.subr.bf16.mxu0 %v339_v0  ;;  %v322_v1 = vld [vmem:[%s436_s1 + $0x8] sm:$0xff]   ;;  %304 = vmatprep.mubr.msk.bf16.mxu0 %vm340_vm0, %v339_v0  ;;  %v323_v2 = vld [vmem:[%s436_s1] sm:$0xff]   ;;  %v325_v4 = vld [vmem:[%s438_s3 + $0x18] sm:$0xff]   ;;  %vm119_vm2 = vcmask 519168   ;;  %vm167_vm3 = vcmask 523264   ;;  %vm267_vm4 = vcmask 257024  }
   0x2   :  { %308 = vmatprep.subr.bf16.mxu1 %v339_v0  ;;  %316 = vmatprep.mubr.msk.bf16.mxu1 %vm340_vm0, %v339_v0  ;;  %v390_v3 = vld [vmem:[%s437_s0] sm:$0xff]   ;;  %v326_v5 = vld [vmem:[%s438_s3 + $0x10] sm:$0xff]   ;;  %v327_v6 = vld [vmem:[%s438_s3 + $0x8] sm:$0xff]   ;;  %v36_v9 = vshrl.u32 %v35_v8, 7 }
   0x3   :  { %301 = vmatpush3.bf16.msra.mxu0 %v322_v1  ;;  %309 = vmatpush3.bf16.msra.mxu1 %v325_v4  ;;  %v328_v7 = vld [vmem:[%s438_s3] sm:$0xff]   ;;  %v212_v36 = vunpack.c.l.bf16 %v390_v3  ;;  %v213_v41 = vunpack.c.h.bf16 %v390_v3 }
   0x4   :  { %302 = vmatprep.subr.bf16.mxu0 %v339_v0  ;;  %310 = vmatprep.subr.bf16.mxu1 %v339_v0  ;;  %v33_v10 = vld [vmem:[%s439_s2] sm:$0x1]  ;;  %v409_v12 = vsub.s32 0, %v36_v9 }
   0x5   :  { %v34_v11 = vunpack.c.l.bf16 %v33_v10  ;;  %v132_v33 = vld [vmem:[%s440_s4] sm:$0x1] }
   0x6   :  { %v133_v34 = vunpack.c.l.bf16 %v132_v33  ;;  %v251_v1 = vld [vmem:[%s442_s6] sm:$0x1] }
   0x7   :  { %303 = vmatpush3.bf16.msra.mxu0 %v323_v2  ;;  %311 = vmatpush3.bf16.msra.mxu1 %v326_v5  ;;  %v38_v13 = vrot.slane %v34_v11, %v409_v12 }
   0x8   :  { %312 = vmatprep.subr.bf16.mxu1 %v339_v0  ;;  %v137_v35 = vrot.slane %v133_v34, %v409_v12 }
   0xa   :  { %305 = vmatmul.mubr.msk.bf16.vlgmr.msra.gmra.mxu0 %vm56_vm1, %v390_v3  ;;  %v252_v3 = vunpack.c.l.bf16 %v251_v1 }
   0xb   :  { %313 = vmatpush3.bf16.msra.mxu1 %v327_v6 }
   0xc   :  { %314 = vmatprep.subr.bf16.mxu1 %v339_v0  ;;  %v243_v0 = vld [vmem:[%s441_s5] sm:$0x1]  ;;  %v256_v6 = vrot.slane %v252_v3, %v409_v12 }
   0xd   :  { %v244_v2 = vunpack.c.l.bf16 %v243_v0 }
   0xf   :  { %315 = vmatpush3.bf16.msra.mxu1 %v328_v7  ;;  %v248_v4 = vrot.slane %v244_v2, %v409_v12 }
  0xca   :  { %v94_v14 = vpop.f32.mrf.mxu0 }
  0xcb   :  { %v95_v15 = vadd.f32 %v94_v14, %v38_v13 }
  0xcc   :  { %v306_v16 = vpop.f32.mrf.mxu0 }
  0xcd   :  { %v103_v17 = vmul.f32 0.70710677, %v95_v15  ;;  %v101_v23 = vmul.f32 0.5, %v95_v15 }
  0xce   :  { %v97_v18 = vpop.f32.mrf.mxu0 }
  0xcf   :  { %331 = verf.f32 %v103_v17  ;;  %v98_v19 = vadd.f32 %v97_v18, %v38_v13 }
  0xd0   :  { %v307_v20 = vpop.f32.mrf.mxu0 }
  0xd1   :  { %v104_v21 = vmul.f32 0.70710677, %v98_v19  ;;  %v102_v28 = vmul.f32 0.5, %v98_v19 }
  0xd3   :  { %333 = verf.f32 %v104_v21 }
  0xdc   :  { %v332_v22 = vpop.eup %331 }
  0xdd   :  { %v107_v24 = vadd.f32 1.0, %v332_v22 }
  0xdf   :  { %v109_v25 = vmul.f32 %v107_v24, %v101_v23 }
  0xe0   :  { %v334_v26 = vpop.eup %333 }
  0xe1   :  { %v288_v27 = vpack.c.bf16 %v109_v25, %v109_v25  ;;  %v108_v29 = vadd.f32 1.0, %v334_v26 }
  0xe3   :  { %120 = vst.msk [vmem:[#allocation2] sm:$0xf] %vm119_vm2, %v288_v27  ;;  %v110_v30 = vmul.f32 %v108_v29, %v102_v28 }
  0xe5   :  { %v289_v31 = vpack.c.bf16 %v110_v30, %v110_v30 }
  0xe7   :  { %121 = vst.msk [vmem:[#allocation2 + $0x4] sm:$0xf] %vm119_vm2, %v289_v31 }
  0xee   :  { %v329_v32 = vld [vmem:[#allocation2] sm:$0xff]  }
  0xef   :  { %317 = vmatmul.mubr.msk.bf16.vlgmr.msra.gmra.mxu1 %vm167_vm3, %v329_v32 }
 0x1af   :  { %v205_v37 = vpop.f32.mrf.mxu1 }
 0x1b0   :  { %v206_v38 = vadd.f32 %v205_v37, %v137_v35 }
 0x1b1   :  { %v318_v39 = vpop.f32.mrf.mxu1 }
 0x1b2   :  { %v214_v40 = vadd.f32 %v212_v36, %v206_v38 }
 0x1b3   :  { %v208_v42 = vpop.f32.mrf.mxu1 }
 0x1b4   :  { %v209_v43 = vadd.f32 %v208_v42, %v137_v35  ;;  %v216_v44 = vsel %vm56_vm1, %v214_v40, 0.0 }
 0x1b5   :  { %217 = vadd.xlane.f32.xlu0 %v216_v44  ;;  %v319_v45 = vpop.f32.mrf.mxu1 }
 0x1b6   :  { %v215_v46 = vadd.f32 %v213_v41, %v209_v43 }
 0x1b8   :  { %v219_v47 = vsel %vm56_vm1, %v215_v46, 0.0 }
 0x1b9   :  { %220 = vadd.xlane.f32.xlu0 %v219_v47 }
 0x23e   :  { %v218_v48 = vpop.xlane.xlu0 %217 }
 0x23f   :  { %v223_v49 = vmul.f32 0.03125, %v218_v48 }
 0x241   :  { %v225_v50 = vsub.f32 %v214_v40, %v223_v49 }
 0x242   :  { %v221_v51 = vpop.xlane.xlu0 %220 }
 0x243   :  { %v224_v52 = vmul.f32 0.03125, %v221_v51  ;;  %v227_v53 = vmul.f32 %v225_v50, %v225_v50 }
 0x245   :  { %v226_v54 = vsub.f32 %v215_v46, %v224_v52  ;;  %v229_v55 = vsel %vm56_vm1, %v227_v53, 0.0 }
 0x246   :  { %230 = vadd.xlane.f32.xlu1 %v229_v55 }
 0x247   :  { %v228_v56 = vmul.f32 %v226_v54, %v226_v54 }
 0x249   :  { %v232_v57 = vsel %vm56_vm1, %v228_v56, 0.0 }
 0x24a   :  { %233 = vadd.xlane.f32.xlu1 %v232_v57 }
 0x2cf   :  { %v231_v58 = vpop.xlane.xlu1 %230 }
 0x2d0   :  { %v235_v59 = vmul.f32 0.03125, %v231_v58 }
 0x2d2   :  { %v237_v60 = vadd.f32 1e-12, %v235_v59 }
 0x2d3   :  { %v234_v61 = vpop.xlane.xlu1 %233 }
 0x2d4   :  { %335 = vrsqrt.f32 %v237_v60  ;;  %v236_v62 = vmul.f32 0.03125, %v234_v61 }
 0x2d6   :  { %v238_v63 = vadd.f32 1e-12, %v236_v62 }
 0x2d8   :  { %337 = vrsqrt.f32 %v238_v63 }
 0x2e1   :  { %v336_v5 = vpop.eup %335 }
 0x2e2   :  { %v241_v7 = vmul.f32 %v336_v5, %v225_v50 }
 0x2e4   :  { %v249_v8 = vmul.f32 %v248_v4, %v241_v7 }
 0x2e5   :  { %v338_v9 = vpop.eup %337 }
 0x2e6   :  { %v257_v10 = vadd.f32 %v256_v6, %v249_v8  ;;  %v242_v11 = vmul.f32 %v338_v9, %v226_v54 }
 0x2e8   :  { %v290_v13 = vpack.c.bf16 %v257_v10, %v257_v10  ;;  %v250_v14 = vmul.f32 %v248_v4, %v242_v11 }
 0x2ea   :  { %268 = vst.msk [vmem:[%s443_s7] sm:$0xf] %vm267_vm4, %v290_v13  ;;  %v258_v15 = vadd.f32 %v256_v6, %v250_v14 }
 0x2ec   :  { %v291_v16 = vpack.c.bf16 %v258_v15, %v258_v15 }
 0x2ee   :  { %269 = vst.msk [vmem:[%s443_s7 + $0x4] sm:$0xf] %vm267_vm4, %v291_v16 }

// kernel: bert_forward.19
= control target key start
LH: loop header
LB: loop body
LE: loop exit
PB: predicated region body
PF: predicated region fallthrough
CT: control target
= control target key end

     0   :  { %v144_v1 = vmov 0.0   ;;  %vm145_vm0 = vmmov 0   ;;  %s182_s0 = inlined_call_operand.vmem [shape: bf16[2,32], index: 0, kind: input, shape index: {}]   ;;  %s183_s1 = inlined_call_operand.vmem [shape: bf16[32,32], index: 1, kind: input, shape index: {}]   ;;  %s184_s2 = inlined_call_operand.vmem [shape: bf16[1,32], index: 2, kind: input, shape index: {}]   ;;  %s185_s3 = inlined_call_operand.hbm [shape: bf16[2,32], index: 3, kind: output, shape index: {}]  }
   0x1   :  { %v118_v0 = vld [vmem:[%s183_s1 + $0x8] sm:$0xff]   ;;  %107 = vmatprep.subr.bf16.mxu0 %v144_v1  ;;  %v119_v2 = vld [vmem:[%s183_s1] sm:$0xff]   ;;  %111 = vmatprep.mubr.msk.bf16.mxu0 %vm145_vm0, %v144_v1 }
   0x2   :  { %108 = vmatpush3.bf16.msra.mxu0 %v118_v0 }
   0x3   :  { %109 = vmatprep.subr.bf16.mxu0 %v144_v1 }
   0x4   :  { %8 = vsyncpa [#allocation3], 0  ;;  %v16_v3 = vld [vmem:[%s182_s0] sm:$0x1]  ;;  %vm39_vm1 = vcmask 261120   ;;  %v23_v4 = vlaneseq  ;;  %s146_s1 = smov [#allocation2]  }
   0x5   :  { %v21_v6 = vld [vmem:[%s184_s2] sm:$0x1]  ;;  %s93_s20 = sshll.u32 %s146_s1, 4  ;;  %vm85_vm2 = vcmask 253952   ;;  %s94_s20 = int_to_ptr.vmem [resolvable:$true] %s93_s20 }
   0x6   :  { %110 = vmatpush3.bf16.msra.mxu0 %v119_v2  ;;  %v24_v5 = vshrl.u32 %v23_v4, 7  ;;  %v22_v7 = vunpack.c.l.bf16 %v21_v6  ;;  %s122_s0 = scalar_lea.vmem %s94_s20, 16  ;;  %s126_s21 = scalar_lea.vmem %s94_s20, 32 }
   0x7   :  { %p123_p0 = scmp.ne.s32.totalorder %s94_s20, %s122_s0  ;;  %p127_p1 = scmp.lt.s32.totalorder %s94_s20, %s94_s20 }
   0x8   :  { %v25_v8 = vsub.s32 0, %v24_v5  ;;  %p128_p2 = scmp.lt.s32.totalorder %s126_s21, %s122_s0 }
   0x9   :  { %112 = vmatmul.mubr.msk.bf16.vlgmr.msra.gmra.mxu0 %vm39_vm1, %v16_v3 }
   0xa   :  { %v26_v9 = vrot.slane %v22_v7, %v25_v8  ;;  %p129_p3 = por %p128_p2, %p127_p1 }
   0xc   :  { %p130_p4 = pnand %p129_p3, %p123_p0 }
  0xc9   :  { %v77_v10 = vpop.f32.mrf.mxu0 }
  0xca   :  { %v78_v11 = vadd.f32 %v77_v10, %v26_v9 }
  0xcb   :  { %v113_v12 = vpop.f32.mrf.mxu0 }
  0xcc   :  { %120 = vtanh.f32 %v78_v11 }
  0xcd   :  { %v80_v13 = vpop.f32.mrf.mxu0 }
  0xcf   :  { %v114_v14 = vpop.f32.mrf.mxu0 }
  0xd9   :  { %v121_v15 = vpop.eup %120 }
  0xda   :  { %v84_v16 = vpack.c.bf16 %v121_v15, %v121_v15 }
  0xdc   :  { %86 = vst.msk [vmem:[#allocation2] sm:$0x1] %vm85_vm2, %v84_v16 }
  0xdd   :  { %133 = shalt.err (!%p130_p4)
}
  0xde   :  { %96 = dma.vmem_to_hbm [thread:$0]  %s94_s20, 16, %s185_s3, [#allocation3]  }
  0xdf   :  { %142 = dma.done.wait [#allocation3], 16  }
  0xe0   :  { %143 = vsyncadd [#allocation3], 4294967280 }
  0xe1   :  { %100 = vsyncpa [#allocation3], 1 }

</bundles_post_ra>
